<compile_context>
chip_gen: v7x
topology: tpu7x:2x2x1
jax: 0.10.0
libtpu: 0.0.40
codegen_flags: <defaults>
</compile_context>

<pallas_src>
import functools
import math

import jax
import jax.numpy as jnp
import numpy as np
from jax import lax
from jax.experimental import pallas as pl
from jax.experimental.pallas import tpu as pltpu

IMAGE_SIZE = 64          # H == W
VIEW_ANGLE_DEG = 30.0    # neural_renderer default viewing_angle
LANES = 128              # vreg lane width


# ----------------------------------------------------------------------------
# Pallas kernel: hard silhouette rasterization + squared-error loss, one pose
# per grid step (grid = (K,) poses).
# ----------------------------------------------------------------------------
def silhouette_loss_kernel(coeffs_ref, ref_hbm, loss_ref, ref_vmem, sem,
                           *, image_w, n_faces):
    # coeffs_ref : SMEM (K, F*9) f32   winding-normalized edge coeffs per pose
    #              [A0,B0,C0, A1,B1,C1, A2,B2,C2] per face, e = A*x + B*y + C
    # ref_hbm    : ANY  (rows, 128) f32  reference silhouette (lane-dense, HBM)
    # loss_ref   : VMEM (1, 128) f32     per-pose loss block (scalar broadcast)
    # ref_vmem   : VMEM (rows, 128) f32  scratch for the reference image
    # sem        : DMA semaphore
    k = pl.program_id(0)
    rows, lanes = ref_vmem.shape

    # Kick off the reference-image DMA; it is only needed for the final diff,
    # so the face loop below runs while it is in flight.
    ref_copy = pltpu.make_async_copy(ref_hbm, ref_vmem, sem)
    ref_copy.start()

    # Pixel centers via shift/mask (image_w is a static power of two and
    # lanes is a multiple of image_w).
    shift_w = int(image_w).bit_length() - 1
    lanes_per_row = lanes // image_w
    row_i = lax.broadcasted_iota(jnp.int32, (rows, lanes), 0)
    lane_i = lax.broadcasted_iota(jnp.int32, (rows, lanes), 1)
    py = (row_i * lanes_per_row + (lane_i >> shift_w)).astype(jnp.float32) + 0.5
    px = (lane_i & (image_w - 1)).astype(jnp.float32) + 0.5

    cov = jnp.zeros((rows, lanes), dtype=jnp.bool_)
    # n_faces is static -> fully unrolled; SMEM reads use (dynamic pose, static
    # offset) indices and all happen before the DMA wait.
    for f in range(n_faces):
        base = f * 9
        a0 = coeffs_ref[k, base + 0]
        b0 = coeffs_ref[k, base + 1]
        c0 = coeffs_ref[k, base + 2]
        a1 = coeffs_ref[k, base + 3]
        b1 = coeffs_ref[k, base + 4]
        c1 = coeffs_ref[k, base + 5]
        a2 = coeffs_ref[k, base + 6]
        b2 = coeffs_ref[k, base + 7]
        c2 = coeffs_ref[k, base + 8]
        e0 = a0 * px + b0 * py + c0
        e1 = a1 * px + b1 * py + c1
        e2 = a2 * px + b2 * py + c2
        inside = jnp.minimum(jnp.minimum(e0, e1), e2) >= 0.0
        cov = cov | inside

    img = cov.astype(jnp.float32)
    ref_copy.wait()                       # ref load overlapped with face loop
    diff = img - ref_vmem[...]
    loss = jnp.sum(diff * diff)
    loss_ref[...] = jnp.zeros((1, lanes), jnp.float32) + loss


def render_silhouette_loss(coeffs, image_ref_flat, *, image_size):
    """coeffs: (K, F*9) f32 edge coefficients; image_ref_flat: (H*W/128, 128) f32.

    Returns per-pose squared-error loss of shape (K,)."""
    K, C = coeffs.shape
    n_faces = C // 9
    rows, lanes = image_ref_flat.shape
    assert rows * lanes == image_size * image_size
    assert (image_size & (image_size - 1)) == 0, "image_size must be a power of 2"
    assert lanes % image_size == 0

    grid_spec = pltpu.PrefetchScalarGridSpec(
        num_scalar_prefetch=1,                       # coeffs -> SMEM before grid
        grid=(K,),
        in_specs=[pl.BlockSpec(memory_space=pl.ANY)],   # ref stays in HBM; manual DMA
        out_specs=pl.BlockSpec((1, lanes), lambda k, coeffs_s: (k, 0)),
        scratch_shapes=[
            pltpu.VMEM((rows, lanes), jnp.float32),
            pltpu.SemaphoreType.DMA,
        ],
    )
    losses = pl.pallas_call(
        functools.partial(silhouette_loss_kernel,
                          image_w=image_size, n_faces=n_faces),
        out_shape=jax.ShapeDtypeStruct((K, lanes), jnp.float32),
        grid_spec=grid_spec,
        compiler_params=pltpu.CompilerParams(
            dimension_semantics=("parallel",)),       # pose batch splits on v7x TCs
    )(coeffs, image_ref_flat)
    return losses[:, 0]


# ----------------------------------------------------------------------------
# Plain-JAX glue: look_at camera transform + perspective projection
# (mirrors neural_renderer.look_at / neural_renderer.perspective)
# ----------------------------------------------------------------------------
def look_at(vertices, eye):
    at = jnp.zeros(3, jnp.float32)
    up = jnp.array([0.0, 1.0, 0.0], jnp.float32)
    z = at - eye
    z = z / jnp.linalg.norm(z)
    x = jnp.cross(up, z)
    x = x / jnp.linalg.norm(x)
    y = jnp.cross(z, x)
    y = y / jnp.linalg.norm(y)
    rot = jnp.stack([x, y, z], axis=0)  # (3, 3)
    return (vertices - eye[None, :]) @ rot.T


def perspective(vertices, angle_deg=VIEW_ANGLE_DEG):
    width = math.tan(math.radians(angle_deg))
    # near-plane guard: avoid inf/NaN coefficients for degenerate cameras
    z = jnp.maximum(vertices[:, 2], 1e-5)
    x = vertices[:, 0] / (z * width)
    y = vertices[:, 1] / (z * width)
    return jnp.stack([x, y, z], axis=-1)


def face_edge_coefficients(vertices, faces, camera_position, image_size):
    """Project faces to pixel space; emit winding-normalized edge coeffs (F*9,)."""
    v_cam = look_at(vertices, camera_position)            # (V, 3)
    v_ndc = perspective(v_cam)                            # (V, 3), x/y in ~[-1,1]
    # neural_renderer-style NDC -> pixel mapping: [-1, 1] -> [0, image_size]
    px = (v_ndc[:, 0] + 1.0) * image_size * 0.5
    py = (1.0 - v_ndc[:, 1]) * image_size * 0.5           # flip y for image rows
    v_pix = jnp.stack([px, py], axis=-1)                  # (V, 2)
    tri = v_pix[faces]                                    # (F, 3, 2)
    x0, y0 = tri[:, 0, 0], tri[:, 0, 1]
    x1, y1 = tri[:, 1, 0], tri[:, 1, 1]
    x2, y2 = tri[:, 2, 0], tri[:, 2, 1]

    def edge(xa, ya, xb, yb):
        # e(x, y) = (xb-xa)*(y-ya) - (yb-ya)*(x-xa) = A*x + B*y + C
        a = -(yb - ya)
        b = xb - xa
        c = (yb - ya) * xa - (xb - xa) * ya
        return a, b, c

    a0, b0, c0 = edge(x0, y0, x1, y1)
    a1, b1, c1 = edge(x1, y1, x2, y2)
    a2, b2, c2 = edge(x2, y2, x0, y0)
    # winding normalization: interior is "all edges >= 0" after flipping CW faces
    area2 = (x1 - x0) * (y2 - y0) - (y1 - y0) * (x2 - x0)
    sign = jnp.where(area2 < 0.0, -1.0, 1.0)
    coeffs = jnp.stack([a0, b0, c0, a1, b1, c1, a2, b2, c2], axis=-1)  # (F, 9)
    coeffs = coeffs * sign[:, None]
    # degenerate (zero-area) faces cover nothing
    degenerate_fill = jnp.array([0.0, 0.0, -1.0] * 3, jnp.float32)
    valid = jnp.abs(area2) > 1e-12
    coeffs = jnp.where(valid[:, None], coeffs, degenerate_fill[None, :])
    return coeffs.reshape(-1).astype(jnp.float32)          # (F*9,)


@functools.partial(jax.jit, static_argnames=("image_size",))
def silhouette_forward(vertices, faces, camera_positions, image_ref_flat, image_size):
    # camera_positions: (K, 3) -> per-pose loss (K,) from a single pallas_call
    coeffs = jax.vmap(
        lambda cam: face_edge_coefficients(vertices, faces, cam, image_size)
    )(camera_positions)                                    # (K, F*9)
    return render_silhouette_loss(coeffs, image_ref_flat, image_size=image_size)


# ----------------------------------------------------------------------------
# Model: synthetic deterministic "obj" (unit cube mesh) + reference silhouette
# ----------------------------------------------------------------------------
def make_cube_mesh():
    verts = np.array(
        [
            [-1, -1, -1], [1, -1, -1], [1, 1, -1], [-1, 1, -1],
            [-1, -1, 1], [1, -1, 1], [1, 1, 1], [-1, 1, 1],
        ],
        dtype=np.float32,
    )
    faces = np.array(
        [
            [0, 1, 2], [0, 2, 3],  # back
            [4, 6, 5], [4, 7, 6],  # front
            [0, 4, 5], [0, 5, 1],  # bottom
            [3, 2, 6], [3, 6, 7],  # top
            [0, 3, 7], [0, 7, 4],  # left
            [1, 5, 6], [1, 6, 2],  # right
        ],
        dtype=np.int32,
    )
    return verts, faces


class PallasSilhouetteModel:
    """JAX/Pallas port of the PyTorch Model (camera-pose silhouette fitting).

    NOTE: hard 0/1 coverage is non-differentiable (forward-only port); the
    original neural_renderer rasterizer supplies approximate gradients.
    """

    def __init__(self, key, image_size=IMAGE_SIZE):
        assert (image_size * image_size) % LANES == 0
        verts_np, faces_np = make_cube_mesh()
        # deterministic jitter stands in for the loaded .obj geometry
        jitter = 0.02 * jax.random.normal(key, verts_np.shape, dtype=jnp.float32)
        self.vertices = jnp.asarray(verts_np) + jitter        # (V, 3)
        self.faces = jnp.asarray(faces_np)                    # (F, 3)
        # TODO(synk): textures buffer (1, F, 2, 2, 2, 3) is registered in the
        # original module but unused in the 'silhouettes' forward; omitted.
        self.camera_position = jnp.array([6.0, 10.0, -14.0], jnp.float32)
        # deterministic synthetic reference silhouette (stands in for imread)
        H = W = image_size
        yy = jnp.arange(H, dtype=jnp.float32)[:, None] + 0.5
        xx = jnp.arange(W, dtype=jnp.float32)[None, :] + 0.5
        r2 = (xx - W / 2.0) ** 2 + (yy - H / 2.0) ** 2
        image_ref = (r2 <= (0.18 * H) ** 2).astype(jnp.float32)     # (H, W)
        # lane-dense, row-major flattening to (H*W/128, 128)
        self.image_ref = image_ref
        self.image_ref_flat = image_ref.reshape(H * W // LANES, LANES)
        self.image_size = image_size

    def forward(self):
        # Same semantics as the PyTorch module: one pose, returns the scalar loss.
        losses = silhouette_forward(
            self.vertices, self.faces, self.camera_position[None, :],
            self.image_ref_flat, self.image_size,
        )
        return losses[0]

    def evaluate_poses(self, camera_positions):
        # Batched path for a pose-fitting loop: one pallas_call evaluates K
        # candidate camera poses (grid=(K,), parallel across v7x TensorCores).
        return silhouette_forward(
            self.vertices, self.faces, camera_positions,
            self.image_ref_flat, self.image_size,
        )


if __name__ == "__main__":
    key0, key1, key2 = jax.random.split(jax.random.PRNGKey(0), 3)
    model = PallasSilhouetteModel(key1)

    # single-pose forward (K = 1), matches the PyTorch module
    loss = model.forward()             # includes jit compile
    loss = jax.block_until_ready(loss)
    loss = jax.block_until_ready(model.forward())   # compiled path
    assert loss.shape == ()
    assert bool(jnp.isfinite(loss))

    # batched candidate poses (K = 8) exercised through the same kernel
    candidates = model.camera_position[None, :] + 0.5 * jax.random.normal(
        key2, (8, 3), dtype=jnp.float32)
    losses = jax.block_until_ready(model.evaluate_poses(candidates))
    assert losses.shape == (8,)
    assert bool(jnp.all(jnp.isfinite(losses)))

    print("KERNEL_OK")
</pallas_src>

<mosaic_0001>
module attributes {stable_mosaic.version = 11 : i64} {
  func.func @silhouette_loss_kernel(%arg0: i32, %arg1: memref<1x108xf32, #tpu.memory_space<smem>>, %arg2: memref<32x128xf32, #tpu.memory_space<any>>, %arg3: memref<1x128xf32, #tpu.memory_space<vmem>>, %arg4: memref<32x128xf32, #tpu.memory_space<vmem>>, %arg5: memref<!tpu.dma_semaphore, #tpu.memory_space<semaphore_mem>>) attributes {dimension_semantics = [#tpu.dimension_semantics<parallel>], iteration_bounds = array<i64: 1>, scalar_prefetch = 1 : i64, scratch_operands = 2 : i64, tpu.core_type = #tpu.core_type<tc>, window_params = [{}, {transform_indices = @transform_1, window_bounds = array<i64: 1, 128>}]} {
    tpu.enqueue_dma source(%arg2 : memref<32x128xf32, #tpu.memory_space<any>>) target(%arg4 : memref<32x128xf32, #tpu.memory_space<vmem>>) target_semaphore(%arg5 : memref<!tpu.dma_semaphore, #tpu.memory_space<semaphore_mem>>)
    %0 = tpu.iota {dimensions = array<i32: 0>} : vector<32x128xi32>
    %1 = tpu.iota {dimensions = array<i32: 1>} : vector<32x128xi32>
    %c2_i32 = arith.constant 2 : i32
    %2 = vector.broadcast %c2_i32 : i32 to vector<32x128xi32>
    %3 = arith.muli %0, %2 : vector<32x128xi32>
    %c6_i32 = arith.constant 6 : i32
    %4 = vector.broadcast %c6_i32 : i32 to vector<32x128xi32>
    %5 = arith.shrsi %1, %4 : vector<32x128xi32>
    %6 = arith.addi %3, %5 : vector<32x128xi32>
    %7 = arith.sitofp %6 : vector<32x128xi32> to vector<32x128xf32>
    %cst = arith.constant 5.000000e-01 : f32
    %8 = vector.broadcast %cst : f32 to vector<32x128xf32>
    %9 = arith.addf %7, %8 : vector<32x128xf32>
    %c63_i32 = arith.constant 63 : i32
    %10 = vector.broadcast %c63_i32 : i32 to vector<32x128xi32>
    %11 = arith.andi %1, %10 : vector<32x128xi32>
    %12 = arith.sitofp %11 : vector<32x128xi32> to vector<32x128xf32>
    %cst_0 = arith.constant 5.000000e-01 : f32
    %13 = vector.broadcast %cst_0 : f32 to vector<32x128xf32>
    %14 = arith.addf %12, %13 : vector<32x128xf32>
    %false = arith.constant false
    %15 = vector.broadcast %false : i1 to vector<32x128xi1>
    %16 = arith.index_cast %arg0 : i32 to index
    %c0 = arith.constant 0 : index
    %17 = memref.load %arg1[%16, %c0] : memref<1x108xf32, #tpu.memory_space<smem>>
    %18 = arith.index_cast %arg0 : i32 to index
    %c1 = arith.constant 1 : index
    %19 = memref.load %arg1[%18, %c1] : memref<1x108xf32, #tpu.memory_space<smem>>
    %20 = arith.index_cast %arg0 : i32 to index
    %c2 = arith.constant 2 : index
    %21 = memref.load %arg1[%20, %c2] : memref<1x108xf32, #tpu.memory_space<smem>>
    %22 = arith.index_cast %arg0 : i32 to index
    %c3 = arith.constant 3 : index
    %23 = memref.load %arg1[%22, %c3] : memref<1x108xf32, #tpu.memory_space<smem>>
    %24 = arith.index_cast %arg0 : i32 to index
    %c4 = arith.constant 4 : index
    %25 = memref.load %arg1[%24, %c4] : memref<1x108xf32, #tpu.memory_space<smem>>
    %26 = arith.index_cast %arg0 : i32 to index
    %c5 = arith.constant 5 : index
    %27 = memref.load %arg1[%26, %c5] : memref<1x108xf32, #tpu.memory_space<smem>>
    %28 = arith.index_cast %arg0 : i32 to index
    %c6 = arith.constant 6 : index
    %29 = memref.load %arg1[%28, %c6] : memref<1x108xf32, #tpu.memory_space<smem>>
    %30 = arith.index_cast %arg0 : i32 to index
    %c7 = arith.constant 7 : index
    %31 = memref.load %arg1[%30, %c7] : memref<1x108xf32, #tpu.memory_space<smem>>
    %32 = arith.index_cast %arg0 : i32 to index
    %c8 = arith.constant 8 : index
    %33 = memref.load %arg1[%32, %c8] : memref<1x108xf32, #tpu.memory_space<smem>>
    %34 = vector.broadcast %17 : f32 to vector<32x128xf32>
    %35 = arith.mulf %34, %14 : vector<32x128xf32>
    %36 = vector.broadcast %19 : f32 to vector<32x128xf32>
    %37 = arith.mulf %36, %9 : vector<32x128xf32>
    %38 = arith.addf %35, %37 : vector<32x128xf32>
    %39 = vector.broadcast %21 : f32 to vector<32x128xf32>
    %40 = arith.addf %38, %39 : vector<32x128xf32>
    %41 = vector.broadcast %23 : f32 to vector<32x128xf32>
    %42 = arith.mulf %41, %14 : vector<32x128xf32>
    %43 = vector.broadcast %25 : f32 to vector<32x128xf32>
    %44 = arith.mulf %43, %9 : vector<32x128xf32>
    %45 = arith.addf %42, %44 : vector<32x128xf32>
    %46 = vector.broadcast %27 : f32 to vector<32x128xf32>
    %47 = arith.addf %45, %46 : vector<32x128xf32>
    %48 = vector.broadcast %29 : f32 to vector<32x128xf32>
    %49 = arith.mulf %48, %14 : vector<32x128xf32>
    %50 = vector.broadcast %31 : f32 to vector<32x128xf32>
    %51 = arith.mulf %50, %9 : vector<32x128xf32>
    %52 = arith.addf %49, %51 : vector<32x128xf32>
    %53 = vector.broadcast %33 : f32 to vector<32x128xf32>
    %54 = arith.addf %52, %53 : vector<32x128xf32>
    %55 = arith.minimumf %40, %47 : vector<32x128xf32>
    %56 = arith.minimumf %55, %54 : vector<32x128xf32>
    %cst_1 = arith.constant 0.000000e+00 : f32
    %57 = vector.broadcast %cst_1 : f32 to vector<32x128xf32>
    %58 = arith.cmpf oge, %56, %57 : vector<32x128xf32>
    %59 = arith.ori %15, %58 : vector<32x128xi1>
    %60 = arith.index_cast %arg0 : i32 to index
    %c9 = arith.constant 9 : index
    %61 = memref.load %arg1[%60, %c9] : memref<1x108xf32, #tpu.memory_space<smem>>
    %62 = arith.index_cast %arg0 : i32 to index
    %c10 = arith.constant 10 : index
    %63 = memref.load %arg1[%62, %c10] : memref<1x108xf32, #tpu.memory_space<smem>>
    %64 = arith.index_cast %arg0 : i32 to index
    %c11 = arith.constant 11 : index
    %65 = memref.load %arg1[%64, %c11] : memref<1x108xf32, #tpu.memory_space<smem>>
    %66 = arith.index_cast %arg0 : i32 to index
    %c12 = arith.constant 12 : index
    %67 = memref.load %arg1[%66, %c12] : memref<1x108xf32, #tpu.memory_space<smem>>
    %68 = arith.index_cast %arg0 : i32 to index
    %c13 = arith.constant 13 : index
    %69 = memref.load %arg1[%68, %c13] : memref<1x108xf32, #tpu.memory_space<smem>>
    %70 = arith.index_cast %arg0 : i32 to index
    %c14 = arith.constant 14 : index
    %71 = memref.load %arg1[%70, %c14] : memref<1x108xf32, #tpu.memory_space<smem>>
    %72 = arith.index_cast %arg0 : i32 to index
    %c15 = arith.constant 15 : index
    %73 = memref.load %arg1[%72, %c15] : memref<1x108xf32, #tpu.memory_space<smem>>
    %74 = arith.index_cast %arg0 : i32 to index
    %c16 = arith.constant 16 : index
    %75 = memref.load %arg1[%74, %c16] : memref<1x108xf32, #tpu.memory_space<smem>>
    %76 = arith.index_cast %arg0 : i32 to index
    %c17 = arith.constant 17 : index
    %77 = memref.load %arg1[%76, %c17] : memref<1x108xf32, #tpu.memory_space<smem>>
    %78 = vector.broadcast %61 : f32 to vector<32x128xf32>
    %79 = arith.mulf %78, %14 : vector<32x128xf32>
    %80 = vector.broadcast %63 : f32 to vector<32x128xf32>
    %81 = arith.mulf %80, %9 : vector<32x128xf32>
    %82 = arith.addf %79, %81 : vector<32x128xf32>
    %83 = vector.broadcast %65 : f32 to vector<32x128xf32>
    %84 = arith.addf %82, %83 : vector<32x128xf32>
    %85 = vector.broadcast %67 : f32 to vector<32x128xf32>
    %86 = arith.mulf %85, %14 : vector<32x128xf32>
    %87 = vector.broadcast %69 : f32 to vector<32x128xf32>
    %88 = arith.mulf %87, %9 : vector<32x128xf32>
    %89 = arith.addf %86, %88 : vector<32x128xf32>
    %90 = vector.broadcast %71 : f32 to vector<32x128xf32>
    %91 = arith.addf %89, %90 : vector<32x128xf32>
    %92 = vector.broadcast %73 : f32 to vector<32x128xf32>
    %93 = arith.mulf %92, %14 : vector<32x128xf32>
    %94 = vector.broadcast %75 : f32 to vector<32x128xf32>
    %95 = arith.mulf %94, %9 : vector<32x128xf32>
    %96 = arith.addf %93, %95 : vector<32x128xf32>
    %97 = vector.broadcast %77 : f32 to vector<32x128xf32>
    %98 = arith.addf %96, %97 : vector<32x128xf32>
    %99 = arith.minimumf %84, %91 : vector<32x128xf32>
    %100 = arith.minimumf %99, %98 : vector<32x128xf32>
    %cst_2 = arith.constant 0.000000e+00 : f32
    %101 = vector.broadcast %cst_2 : f32 to vector<32x128xf32>
    %102 = arith.cmpf oge, %100, %101 : vector<32x128xf32>
    %103 = arith.ori %59, %102 : vector<32x128xi1>
    %104 = arith.index_cast %arg0 : i32 to index
    %c18 = arith.constant 18 : index
    %105 = memref.load %arg1[%104, %c18] : memref<1x108xf32, #tpu.memory_space<smem>>
    %106 = arith.index_cast %arg0 : i32 to index
    %c19 = arith.constant 19 : index
    %107 = memref.load %arg1[%106, %c19] : memref<1x108xf32, #tpu.memory_space<smem>>
    %108 = arith.index_cast %arg0 : i32 to index
    %c20 = arith.constant 20 : index
    %109 = memref.load %arg1[%108, %c20] : memref<1x108xf32, #tpu.memory_space<smem>>
    %110 = arith.index_cast %arg0 : i32 to index
    %c21 = arith.constant 21 : index
    %111 = memref.load %arg1[%110, %c21] : memref<1x108xf32, #tpu.memory_space<smem>>
    %112 = arith.index_cast %arg0 : i32 to index
    %c22 = arith.constant 22 : index
    %113 = memref.load %arg1[%112, %c22] : memref<1x108xf32, #tpu.memory_space<smem>>
    %114 = arith.index_cast %arg0 : i32 to index
    %c23 = arith.constant 23 : index
    %115 = memref.load %arg1[%114, %c23] : memref<1x108xf32, #tpu.memory_space<smem>>
    %116 = arith.index_cast %arg0 : i32 to index
    %c24 = arith.constant 24 : index
    %117 = memref.load %arg1[%116, %c24] : memref<1x108xf32, #tpu.memory_space<smem>>
    %118 = arith.index_cast %arg0 : i32 to index
    %c25 = arith.constant 25 : index
    %119 = memref.load %arg1[%118, %c25] : memref<1x108xf32, #tpu.memory_space<smem>>
    %120 = arith.index_cast %arg0 : i32 to index
    %c26 = arith.constant 26 : index
    %121 = memref.load %arg1[%120, %c26] : memref<1x108xf32, #tpu.memory_space<smem>>
    %122 = vector.broadcast %105 : f32 to vector<32x128xf32>
    %123 = arith.mulf %122, %14 : vector<32x128xf32>
    %124 = vector.broadcast %107 : f32 to vector<32x128xf32>
    %125 = arith.mulf %124, %9 : vector<32x128xf32>
    %126 = arith.addf %123, %125 : vector<32x128xf32>
    %127 = vector.broadcast %109 : f32 to vector<32x128xf32>
    %128 = arith.addf %126, %127 : vector<32x128xf32>
    %129 = vector.broadcast %111 : f32 to vector<32x128xf32>
    %130 = arith.mulf %129, %14 : vector<32x128xf32>
    %131 = vector.broadcast %113 : f32 to vector<32x128xf32>
    %132 = arith.mulf %131, %9 : vector<32x128xf32>
    %133 = arith.addf %130, %132 : vector<32x128xf32>
    %134 = vector.broadcast %115 : f32 to vector<32x128xf32>
    %135 = arith.addf %133, %134 : vector<32x128xf32>
    %136 = vector.broadcast %117 : f32 to vector<32x128xf32>
    %137 = arith.mulf %136, %14 : vector<32x128xf32>
    %138 = vector.broadcast %119 : f32 to vector<32x128xf32>
    %139 = arith.mulf %138, %9 : vector<32x128xf32>
    %140 = arith.addf %137, %139 : vector<32x128xf32>
    %141 = vector.broadcast %121 : f32 to vector<32x128xf32>
    %142 = arith.addf %140, %141 : vector<32x128xf32>
    %143 = arith.minimumf %128, %135 : vector<32x128xf32>
    %144 = arith.minimumf %143, %142 : vector<32x128xf32>
    %cst_3 = arith.constant 0.000000e+00 : f32
    %145 = vector.broadcast %cst_3 : f32 to vector<32x128xf32>
    %146 = arith.cmpf oge, %144, %145 : vector<32x128xf32>
    %147 = arith.ori %103, %146 : vector<32x128xi1>
    %148 = arith.index_cast %arg0 : i32 to index
    %c27 = arith.constant 27 : index
    %149 = memref.load %arg1[%148, %c27] : memref<1x108xf32, #tpu.memory_space<smem>>
    %150 = arith.index_cast %arg0 : i32 to index
    %c28 = arith.constant 28 : index
    %151 = memref.load %arg1[%150, %c28] : memref<1x108xf32, #tpu.memory_space<smem>>
    %152 = arith.index_cast %arg0 : i32 to index
    %c29 = arith.constant 29 : index
    %153 = memref.load %arg1[%152, %c29] : memref<1x108xf32, #tpu.memory_space<smem>>
    %154 = arith.index_cast %arg0 : i32 to index
    %c30 = arith.constant 30 : index
    %155 = memref.load %arg1[%154, %c30] : memref<1x108xf32, #tpu.memory_space<smem>>
    %156 = arith.index_cast %arg0 : i32 to index
    %c31 = arith.constant 31 : index
    %157 = memref.load %arg1[%156, %c31] : memref<1x108xf32, #tpu.memory_space<smem>>
    %158 = arith.index_cast %arg0 : i32 to index
    %c32 = arith.constant 32 : index
    %159 = memref.load %arg1[%158, %c32] : memref<1x108xf32, #tpu.memory_space<smem>>
    %160 = arith.index_cast %arg0 : i32 to index
    %c33 = arith.constant 33 : index
    %161 = memref.load %arg1[%160, %c33] : memref<1x108xf32, #tpu.memory_space<smem>>
    %162 = arith.index_cast %arg0 : i32 to index
    %c34 = arith.constant 34 : index
    %163 = memref.load %arg1[%162, %c34] : memref<1x108xf32, #tpu.memory_space<smem>>
    %164 = arith.index_cast %arg0 : i32 to index
    %c35 = arith.constant 35 : index
    %165 = memref.load %arg1[%164, %c35] : memref<1x108xf32, #tpu.memory_space<smem>>
    %166 = vector.broadcast %149 : f32 to vector<32x128xf32>
    %167 = arith.mulf %166, %14 : vector<32x128xf32>
    %168 = vector.broadcast %151 : f32 to vector<32x128xf32>
    %169 = arith.mulf %168, %9 : vector<32x128xf32>
    %170 = arith.addf %167, %169 : vector<32x128xf32>
    %171 = vector.broadcast %153 : f32 to vector<32x128xf32>
    %172 = arith.addf %170, %171 : vector<32x128xf32>
    %173 = vector.broadcast %155 : f32 to vector<32x128xf32>
    %174 = arith.mulf %173, %14 : vector<32x128xf32>
    %175 = vector.broadcast %157 : f32 to vector<32x128xf32>
    %176 = arith.mulf %175, %9 : vector<32x128xf32>
    %177 = arith.addf %174, %176 : vector<32x128xf32>
    %178 = vector.broadcast %159 : f32 to vector<32x128xf32>
    %179 = arith.addf %177, %178 : vector<32x128xf32>
    %180 = vector.broadcast %161 : f32 to vector<32x128xf32>
    %181 = arith.mulf %180, %14 : vector<32x128xf32>
    %182 = vector.broadcast %163 : f32 to vector<32x128xf32>
    %183 = arith.mulf %182, %9 : vector<32x128xf32>
    %184 = arith.addf %181, %183 : vector<32x128xf32>
    %185 = vector.broadcast %165 : f32 to vector<32x128xf32>
    %186 = arith.addf %184, %185 : vector<32x128xf32>
    %187 = arith.minimumf %172, %179 : vector<32x128xf32>
    %188 = arith.minimumf %187, %186 : vector<32x128xf32>
    %cst_4 = arith.constant 0.000000e+00 : f32
    %189 = vector.broadcast %cst_4 : f32 to vector<32x128xf32>
    %190 = arith.cmpf oge, %188, %189 : vector<32x128xf32>
    %191 = arith.ori %147, %190 : vector<32x128xi1>
    %192 = arith.index_cast %arg0 : i32 to index
    %c36 = arith.constant 36 : index
    %193 = memref.load %arg1[%192, %c36] : memref<1x108xf32, #tpu.memory_space<smem>>
    %194 = arith.index_cast %arg0 : i32 to index
    %c37 = arith.constant 37 : index
    %195 = memref.load %arg1[%194, %c37] : memref<1x108xf32, #tpu.memory_space<smem>>
    %196 = arith.index_cast %arg0 : i32 to index
    %c38 = arith.constant 38 : index
    %197 = memref.load %arg1[%196, %c38] : memref<1x108xf32, #tpu.memory_space<smem>>
    %198 = arith.index_cast %arg0 : i32 to index
    %c39 = arith.constant 39 : index
    %199 = memref.load %arg1[%198, %c39] : memref<1x108xf32, #tpu.memory_space<smem>>
    %200 = arith.index_cast %arg0 : i32 to index
    %c40 = arith.constant 40 : index
    %201 = memref.load %arg1[%200, %c40] : memref<1x108xf32, #tpu.memory_space<smem>>
    %202 = arith.index_cast %arg0 : i32 to index
    %c41 = arith.constant 41 : index
    %203 = memref.load %arg1[%202, %c41] : memref<1x108xf32, #tpu.memory_space<smem>>
    %204 = arith.index_cast %arg0 : i32 to index
    %c42 = arith.constant 42 : index
    %205 = memref.load %arg1[%204, %c42] : memref<1x108xf32, #tpu.memory_space<smem>>
    %206 = arith.index_cast %arg0 : i32 to index
    %c43 = arith.constant 43 : index
    %207 = memref.load %arg1[%206, %c43] : memref<1x108xf32, #tpu.memory_space<smem>>
    %208 = arith.index_cast %arg0 : i32 to index
    %c44 = arith.constant 44 : index
    %209 = memref.load %arg1[%208, %c44] : memref<1x108xf32, #tpu.memory_space<smem>>
    %210 = vector.broadcast %193 : f32 to vector<32x128xf32>
    %211 = arith.mulf %210, %14 : vector<32x128xf32>
    %212 = vector.broadcast %195 : f32 to vector<32x128xf32>
    %213 = arith.mulf %212, %9 : vector<32x128xf32>
    %214 = arith.addf %211, %213 : vector<32x128xf32>
    %215 = vector.broadcast %197 : f32 to vector<32x128xf32>
    %216 = arith.addf %214, %215 : vector<32x128xf32>
    %217 = vector.broadcast %199 : f32 to vector<32x128xf32>
    %218 = arith.mulf %217, %14 : vector<32x128xf32>
    %219 = vector.broadcast %201 : f32 to vector<32x128xf32>
    %220 = arith.mulf %219, %9 : vector<32x128xf32>
    %221 = arith.addf %218, %220 : vector<32x128xf32>
    %222 = vector.broadcast %203 : f32 to vector<32x128xf32>
    %223 = arith.addf %221, %222 : vector<32x128xf32>
    %224 = vector.broadcast %205 : f32 to vector<32x128xf32>
    %225 = arith.mulf %224, %14 : vector<32x128xf32>
    %226 = vector.broadcast %207 : f32 to vector<32x128xf32>
    %227 = arith.mulf %226, %9 : vector<32x128xf32>
    %228 = arith.addf %225, %227 : vector<32x128xf32>
    %229 = vector.broadcast %209 : f32 to vector<32x128xf32>
    %230 = arith.addf %228, %229 : vector<32x128xf32>
    %231 = arith.minimumf %216, %223 : vector<32x128xf32>
    %232 = arith.minimumf %231, %230 : vector<32x128xf32>
    %cst_5 = arith.constant 0.000000e+00 : f32
    %233 = vector.broadcast %cst_5 : f32 to vector<32x128xf32>
    %234 = arith.cmpf oge, %232, %233 : vector<32x128xf32>
    %235 = arith.ori %191, %234 : vector<32x128xi1>
    %236 = arith.index_cast %arg0 : i32 to index
    %c45 = arith.constant 45 : index
    %237 = memref.load %arg1[%236, %c45] : memref<1x108xf32, #tpu.memory_space<smem>>
    %238 = arith.index_cast %arg0 : i32 to index
    %c46 = arith.constant 46 : index
    %239 = memref.load %arg1[%238, %c46] : memref<1x108xf32, #tpu.memory_space<smem>>
    %240 = arith.index_cast %arg0 : i32 to index
    %c47 = arith.constant 47 : index
    %241 = memref.load %arg1[%240, %c47] : memref<1x108xf32, #tpu.memory_space<smem>>
    %242 = arith.index_cast %arg0 : i32 to index
    %c48 = arith.constant 48 : index
    %243 = memref.load %arg1[%242, %c48] : memref<1x108xf32, #tpu.memory_space<smem>>
    %244 = arith.index_cast %arg0 : i32 to index
    %c49 = arith.constant 49 : index
    %245 = memref.load %arg1[%244, %c49] : memref<1x108xf32, #tpu.memory_space<smem>>
    %246 = arith.index_cast %arg0 : i32 to index
    %c50 = arith.constant 50 : index
    %247 = memref.load %arg1[%246, %c50] : memref<1x108xf32, #tpu.memory_space<smem>>
    %248 = arith.index_cast %arg0 : i32 to index
    %c51 = arith.constant 51 : index
    %249 = memref.load %arg1[%248, %c51] : memref<1x108xf32, #tpu.memory_space<smem>>
    %250 = arith.index_cast %arg0 : i32 to index
    %c52 = arith.constant 52 : index
    %251 = memref.load %arg1[%250, %c52] : memref<1x108xf32, #tpu.memory_space<smem>>
    %252 = arith.index_cast %arg0 : i32 to index
    %c53 = arith.constant 53 : index
    %253 = memref.load %arg1[%252, %c53] : memref<1x108xf32, #tpu.memory_space<smem>>
    %254 = vector.broadcast %237 : f32 to vector<32x128xf32>
    %255 = arith.mulf %254, %14 : vector<32x128xf32>
    %256 = vector.broadcast %239 : f32 to vector<32x128xf32>
    %257 = arith.mulf %256, %9 : vector<32x128xf32>
    %258 = arith.addf %255, %257 : vector<32x128xf32>
    %259 = vector.broadcast %241 : f32 to vector<32x128xf32>
    %260 = arith.addf %258, %259 : vector<32x128xf32>
    %261 = vector.broadcast %243 : f32 to vector<32x128xf32>
    %262 = arith.mulf %261, %14 : vector<32x128xf32>
    %263 = vector.broadcast %245 : f32 to vector<32x128xf32>
    %264 = arith.mulf %263, %9 : vector<32x128xf32>
    %265 = arith.addf %262, %264 : vector<32x128xf32>
    %266 = vector.broadcast %247 : f32 to vector<32x128xf32>
    %267 = arith.addf %265, %266 : vector<32x128xf32>
    %268 = vector.broadcast %249 : f32 to vector<32x128xf32>
    %269 = arith.mulf %268, %14 : vector<32x128xf32>
    %270 = vector.broadcast %251 : f32 to vector<32x128xf32>
    %271 = arith.mulf %270, %9 : vector<32x128xf32>
    %272 = arith.addf %269, %271 : vector<32x128xf32>
    %273 = vector.broadcast %253 : f32 to vector<32x128xf32>
    %274 = arith.addf %272, %273 : vector<32x128xf32>
    %275 = arith.minimumf %260, %267 : vector<32x128xf32>
    %276 = arith.minimumf %275, %274 : vector<32x128xf32>
    %cst_6 = arith.constant 0.000000e+00 : f32
    %277 = vector.broadcast %cst_6 : f32 to vector<32x128xf32>
    %278 = arith.cmpf oge, %276, %277 : vector<32x128xf32>
    %279 = arith.ori %235, %278 : vector<32x128xi1>
    %280 = arith.index_cast %arg0 : i32 to index
    %c54 = arith.constant 54 : index
    %281 = memref.load %arg1[%280, %c54] : memref<1x108xf32, #tpu.memory_space<smem>>
    %282 = arith.index_cast %arg0 : i32 to index
    %c55 = arith.constant 55 : index
    %283 = memref.load %arg1[%282, %c55] : memref<1x108xf32, #tpu.memory_space<smem>>
    %284 = arith.index_cast %arg0 : i32 to index
    %c56 = arith.constant 56 : index
    %285 = memref.load %arg1[%284, %c56] : memref<1x108xf32, #tpu.memory_space<smem>>
    %286 = arith.index_cast %arg0 : i32 to index
    %c57 = arith.constant 57 : index
    %287 = memref.load %arg1[%286, %c57] : memref<1x108xf32, #tpu.memory_space<smem>>
    %288 = arith.index_cast %arg0 : i32 to index
    %c58 = arith.constant 58 : index
    %289 = memref.load %arg1[%288, %c58] : memref<1x108xf32, #tpu.memory_space<smem>>
    %290 = arith.index_cast %arg0 : i32 to index
    %c59 = arith.constant 59 : index
    %291 = memref.load %arg1[%290, %c59] : memref<1x108xf32, #tpu.memory_space<smem>>
    %292 = arith.index_cast %arg0 : i32 to index
    %c60 = arith.constant 60 : index
    %293 = memref.load %arg1[%292, %c60] : memref<1x108xf32, #tpu.memory_space<smem>>
    %294 = arith.index_cast %arg0 : i32 to index
    %c61 = arith.constant 61 : index
    %295 = memref.load %arg1[%294, %c61] : memref<1x108xf32, #tpu.memory_space<smem>>
    %296 = arith.index_cast %arg0 : i32 to index
    %c62 = arith.constant 62 : index
    %297 = memref.load %arg1[%296, %c62] : memref<1x108xf32, #tpu.memory_space<smem>>
    %298 = vector.broadcast %281 : f32 to vector<32x128xf32>
    %299 = arith.mulf %298, %14 : vector<32x128xf32>
    %300 = vector.broadcast %283 : f32 to vector<32x128xf32>
    %301 = arith.mulf %300, %9 : vector<32x128xf32>
    %302 = arith.addf %299, %301 : vector<32x128xf32>
    %303 = vector.broadcast %285 : f32 to vector<32x128xf32>
    %304 = arith.addf %302, %303 : vector<32x128xf32>
    %305 = vector.broadcast %287 : f32 to vector<32x128xf32>
    %306 = arith.mulf %305, %14 : vector<32x128xf32>
    %307 = vector.broadcast %289 : f32 to vector<32x128xf32>
    %308 = arith.mulf %307, %9 : vector<32x128xf32>
    %309 = arith.addf %306, %308 : vector<32x128xf32>
    %310 = vector.broadcast %291 : f32 to vector<32x128xf32>
    %311 = arith.addf %309, %310 : vector<32x128xf32>
    %312 = vector.broadcast %293 : f32 to vector<32x128xf32>
    %313 = arith.mulf %312, %14 : vector<32x128xf32>
    %314 = vector.broadcast %295 : f32 to vector<32x128xf32>
    %315 = arith.mulf %314, %9 : vector<32x128xf32>
    %316 = arith.addf %313, %315 : vector<32x128xf32>
    %317 = vector.broadcast %297 : f32 to vector<32x128xf32>
    %318 = arith.addf %316, %317 : vector<32x128xf32>
    %319 = arith.minimumf %304, %311 : vector<32x128xf32>
    %320 = arith.minimumf %319, %318 : vector<32x128xf32>
    %cst_7 = arith.constant 0.000000e+00 : f32
    %321 = vector.broadcast %cst_7 : f32 to vector<32x128xf32>
    %322 = arith.cmpf oge, %320, %321 : vector<32x128xf32>
    %323 = arith.ori %279, %322 : vector<32x128xi1>
    %324 = arith.index_cast %arg0 : i32 to index
    %c63 = arith.constant 63 : index
    %325 = memref.load %arg1[%324, %c63] : memref<1x108xf32, #tpu.memory_space<smem>>
    %326 = arith.index_cast %arg0 : i32 to index
    %c64 = arith.constant 64 : index
    %327 = memref.load %arg1[%326, %c64] : memref<1x108xf32, #tpu.memory_space<smem>>
    %328 = arith.index_cast %arg0 : i32 to index
    %c65 = arith.constant 65 : index
    %329 = memref.load %arg1[%328, %c65] : memref<1x108xf32, #tpu.memory_space<smem>>
    %330 = arith.index_cast %arg0 : i32 to index
    %c66 = arith.constant 66 : index
    %331 = memref.load %arg1[%330, %c66] : memref<1x108xf32, #tpu.memory_space<smem>>
    %332 = arith.index_cast %arg0 : i32 to index
    %c67 = arith.constant 67 : index
    %333 = memref.load %arg1[%332, %c67] : memref<1x108xf32, #tpu.memory_space<smem>>
    %334 = arith.index_cast %arg0 : i32 to index
    %c68 = arith.constant 68 : index
    %335 = memref.load %arg1[%334, %c68] : memref<1x108xf32, #tpu.memory_space<smem>>
    %336 = arith.index_cast %arg0 : i32 to index
    %c69 = arith.constant 69 : index
    %337 = memref.load %arg1[%336, %c69] : memref<1x108xf32, #tpu.memory_space<smem>>
    %338 = arith.index_cast %arg0 : i32 to index
    %c70 = arith.constant 70 : index
    %339 = memref.load %arg1[%338, %c70] : memref<1x108xf32, #tpu.memory_space<smem>>
    %340 = arith.index_cast %arg0 : i32 to index
    %c71 = arith.constant 71 : index
    %341 = memref.load %arg1[%340, %c71] : memref<1x108xf32, #tpu.memory_space<smem>>
    %342 = vector.broadcast %325 : f32 to vector<32x128xf32>
    %343 = arith.mulf %342, %14 : vector<32x128xf32>
    %344 = vector.broadcast %327 : f32 to vector<32x128xf32>
    %345 = arith.mulf %344, %9 : vector<32x128xf32>
    %346 = arith.addf %343, %345 : vector<32x128xf32>
    %347 = vector.broadcast %329 : f32 to vector<32x128xf32>
    %348 = arith.addf %346, %347 : vector<32x128xf32>
    %349 = vector.broadcast %331 : f32 to vector<32x128xf32>
    %350 = arith.mulf %349, %14 : vector<32x128xf32>
    %351 = vector.broadcast %333 : f32 to vector<32x128xf32>
    %352 = arith.mulf %351, %9 : vector<32x128xf32>
    %353 = arith.addf %350, %352 : vector<32x128xf32>
    %354 = vector.broadcast %335 : f32 to vector<32x128xf32>
    %355 = arith.addf %353, %354 : vector<32x128xf32>
    %356 = vector.broadcast %337 : f32 to vector<32x128xf32>
    %357 = arith.mulf %356, %14 : vector<32x128xf32>
    %358 = vector.broadcast %339 : f32 to vector<32x128xf32>
    %359 = arith.mulf %358, %9 : vector<32x128xf32>
    %360 = arith.addf %357, %359 : vector<32x128xf32>
    %361 = vector.broadcast %341 : f32 to vector<32x128xf32>
    %362 = arith.addf %360, %361 : vector<32x128xf32>
    %363 = arith.minimumf %348, %355 : vector<32x128xf32>
    %364 = arith.minimumf %363, %362 : vector<32x128xf32>
    %cst_8 = arith.constant 0.000000e+00 : f32
    %365 = vector.broadcast %cst_8 : f32 to vector<32x128xf32>
    %366 = arith.cmpf oge, %364, %365 : vector<32x128xf32>
    %367 = arith.ori %323, %366 : vector<32x128xi1>
    %368 = arith.index_cast %arg0 : i32 to index
    %c72 = arith.constant 72 : index
    %369 = memref.load %arg1[%368, %c72] : memref<1x108xf32, #tpu.memory_space<smem>>
    %370 = arith.index_cast %arg0 : i32 to index
    %c73 = arith.constant 73 : index
    %371 = memref.load %arg1[%370, %c73] : memref<1x108xf32, #tpu.memory_space<smem>>
    %372 = arith.index_cast %arg0 : i32 to index
    %c74 = arith.constant 74 : index
    %373 = memref.load %arg1[%372, %c74] : memref<1x108xf32, #tpu.memory_space<smem>>
    %374 = arith.index_cast %arg0 : i32 to index
    %c75 = arith.constant 75 : index
    %375 = memref.load %arg1[%374, %c75] : memref<1x108xf32, #tpu.memory_space<smem>>
    %376 = arith.index_cast %arg0 : i32 to index
    %c76 = arith.constant 76 : index
    %377 = memref.load %arg1[%376, %c76] : memref<1x108xf32, #tpu.memory_space<smem>>
    %378 = arith.index_cast %arg0 : i32 to index
    %c77 = arith.constant 77 : index
    %379 = memref.load %arg1[%378, %c77] : memref<1x108xf32, #tpu.memory_space<smem>>
    %380 = arith.index_cast %arg0 : i32 to index
    %c78 = arith.constant 78 : index
    %381 = memref.load %arg1[%380, %c78] : memref<1x108xf32, #tpu.memory_space<smem>>
    %382 = arith.index_cast %arg0 : i32 to index
    %c79 = arith.constant 79 : index
    %383 = memref.load %arg1[%382, %c79] : memref<1x108xf32, #tpu.memory_space<smem>>
    %384 = arith.index_cast %arg0 : i32 to index
    %c80 = arith.constant 80 : index
    %385 = memref.load %arg1[%384, %c80] : memref<1x108xf32, #tpu.memory_space<smem>>
    %386 = vector.broadcast %369 : f32 to vector<32x128xf32>
    %387 = arith.mulf %386, %14 : vector<32x128xf32>
    %388 = vector.broadcast %371 : f32 to vector<32x128xf32>
    %389 = arith.mulf %388, %9 : vector<32x128xf32>
    %390 = arith.addf %387, %389 : vector<32x128xf32>
    %391 = vector.broadcast %373 : f32 to vector<32x128xf32>
    %392 = arith.addf %390, %391 : vector<32x128xf32>
    %393 = vector.broadcast %375 : f32 to vector<32x128xf32>
    %394 = arith.mulf %393, %14 : vector<32x128xf32>
    %395 = vector.broadcast %377 : f32 to vector<32x128xf32>
    %396 = arith.mulf %395, %9 : vector<32x128xf32>
    %397 = arith.addf %394, %396 : vector<32x128xf32>
    %398 = vector.broadcast %379 : f32 to vector<32x128xf32>
    %399 = arith.addf %397, %398 : vector<32x128xf32>
    %400 = vector.broadcast %381 : f32 to vector<32x128xf32>
    %401 = arith.mulf %400, %14 : vector<32x128xf32>
    %402 = vector.broadcast %383 : f32 to vector<32x128xf32>
    %403 = arith.mulf %402, %9 : vector<32x128xf32>
    %404 = arith.addf %401, %403 : vector<32x128xf32>
    %405 = vector.broadcast %385 : f32 to vector<32x128xf32>
    %406 = arith.addf %404, %405 : vector<32x128xf32>
    %407 = arith.minimumf %392, %399 : vector<32x128xf32>
    %408 = arith.minimumf %407, %406 : vector<32x128xf32>
    %cst_9 = arith.constant 0.000000e+00 : f32
    %409 = vector.broadcast %cst_9 : f32 to vector<32x128xf32>
    %410 = arith.cmpf oge, %408, %409 : vector<32x128xf32>
    %411 = arith.ori %367, %410 : vector<32x128xi1>
    %412 = arith.index_cast %arg0 : i32 to index
    %c81 = arith.constant 81 : index
    %413 = memref.load %arg1[%412, %c81] : memref<1x108xf32, #tpu.memory_space<smem>>
    %414 = arith.index_cast %arg0 : i32 to index
    %c82 = arith.constant 82 : index
    %415 = memref.load %arg1[%414, %c82] : memref<1x108xf32, #tpu.memory_space<smem>>
    %416 = arith.index_cast %arg0 : i32 to index
    %c83 = arith.constant 83 : index
    %417 = memref.load %arg1[%416, %c83] : memref<1x108xf32, #tpu.memory_space<smem>>
    %418 = arith.index_cast %arg0 : i32 to index
    %c84 = arith.constant 84 : index
    %419 = memref.load %arg1[%418, %c84] : memref<1x108xf32, #tpu.memory_space<smem>>
    %420 = arith.index_cast %arg0 : i32 to index
    %c85 = arith.constant 85 : index
    %421 = memref.load %arg1[%420, %c85] : memref<1x108xf32, #tpu.memory_space<smem>>
    %422 = arith.index_cast %arg0 : i32 to index
    %c86 = arith.constant 86 : index
    %423 = memref.load %arg1[%422, %c86] : memref<1x108xf32, #tpu.memory_space<smem>>
    %424 = arith.index_cast %arg0 : i32 to index
    %c87 = arith.constant 87 : index
    %425 = memref.load %arg1[%424, %c87] : memref<1x108xf32, #tpu.memory_space<smem>>
    %426 = arith.index_cast %arg0 : i32 to index
    %c88 = arith.constant 88 : index
    %427 = memref.load %arg1[%426, %c88] : memref<1x108xf32, #tpu.memory_space<smem>>
    %428 = arith.index_cast %arg0 : i32 to index
    %c89 = arith.constant 89 : index
    %429 = memref.load %arg1[%428, %c89] : memref<1x108xf32, #tpu.memory_space<smem>>
    %430 = vector.broadcast %413 : f32 to vector<32x128xf32>
    %431 = arith.mulf %430, %14 : vector<32x128xf32>
    %432 = vector.broadcast %415 : f32 to vector<32x128xf32>
    %433 = arith.mulf %432, %9 : vector<32x128xf32>
    %434 = arith.addf %431, %433 : vector<32x128xf32>
    %435 = vector.broadcast %417 : f32 to vector<32x128xf32>
    %436 = arith.addf %434, %435 : vector<32x128xf32>
    %437 = vector.broadcast %419 : f32 to vector<32x128xf32>
    %438 = arith.mulf %437, %14 : vector<32x128xf32>
    %439 = vector.broadcast %421 : f32 to vector<32x128xf32>
    %440 = arith.mulf %439, %9 : vector<32x128xf32>
    %441 = arith.addf %438, %440 : vector<32x128xf32>
    %442 = vector.broadcast %423 : f32 to vector<32x128xf32>
    %443 = arith.addf %441, %442 : vector<32x128xf32>
    %444 = vector.broadcast %425 : f32 to vector<32x128xf32>
    %445 = arith.mulf %444, %14 : vector<32x128xf32>
    %446 = vector.broadcast %427 : f32 to vector<32x128xf32>
    %447 = arith.mulf %446, %9 : vector<32x128xf32>
    %448 = arith.addf %445, %447 : vector<32x128xf32>
    %449 = vector.broadcast %429 : f32 to vector<32x128xf32>
    %450 = arith.addf %448, %449 : vector<32x128xf32>
    %451 = arith.minimumf %436, %443 : vector<32x128xf32>
    %452 = arith.minimumf %451, %450 : vector<32x128xf32>
    %cst_10 = arith.constant 0.000000e+00 : f32
    %453 = vector.broadcast %cst_10 : f32 to vector<32x128xf32>
    %454 = arith.cmpf oge, %452, %453 : vector<32x128xf32>
    %455 = arith.ori %411, %454 : vector<32x128xi1>
    %456 = arith.index_cast %arg0 : i32 to index
    %c90 = arith.constant 90 : index
    %457 = memref.load %arg1[%456, %c90] : memref<1x108xf32, #tpu.memory_space<smem>>
    %458 = arith.index_cast %arg0 : i32 to index
    %c91 = arith.constant 91 : index
    %459 = memref.load %arg1[%458, %c91] : memref<1x108xf32, #tpu.memory_space<smem>>
    %460 = arith.index_cast %arg0 : i32 to index
    %c92 = arith.constant 92 : index
    %461 = memref.load %arg1[%460, %c92] : memref<1x108xf32, #tpu.memory_space<smem>>
    %462 = arith.index_cast %arg0 : i32 to index
    %c93 = arith.constant 93 : index
    %463 = memref.load %arg1[%462, %c93] : memref<1x108xf32, #tpu.memory_space<smem>>
    %464 = arith.index_cast %arg0 : i32 to index
    %c94 = arith.constant 94 : index
    %465 = memref.load %arg1[%464, %c94] : memref<1x108xf32, #tpu.memory_space<smem>>
    %466 = arith.index_cast %arg0 : i32 to index
    %c95 = arith.constant 95 : index
    %467 = memref.load %arg1[%466, %c95] : memref<1x108xf32, #tpu.memory_space<smem>>
    %468 = arith.index_cast %arg0 : i32 to index
    %c96 = arith.constant 96 : index
    %469 = memref.load %arg1[%468, %c96] : memref<1x108xf32, #tpu.memory_space<smem>>
    %470 = arith.index_cast %arg0 : i32 to index
    %c97 = arith.constant 97 : index
    %471 = memref.load %arg1[%470, %c97] : memref<1x108xf32, #tpu.memory_space<smem>>
    %472 = arith.index_cast %arg0 : i32 to index
    %c98 = arith.constant 98 : index
    %473 = memref.load %arg1[%472, %c98] : memref<1x108xf32, #tpu.memory_space<smem>>
    %474 = vector.broadcast %457 : f32 to vector<32x128xf32>
    %475 = arith.mulf %474, %14 : vector<32x128xf32>
    %476 = vector.broadcast %459 : f32 to vector<32x128xf32>
    %477 = arith.mulf %476, %9 : vector<32x128xf32>
    %478 = arith.addf %475, %477 : vector<32x128xf32>
    %479 = vector.broadcast %461 : f32 to vector<32x128xf32>
    %480 = arith.addf %478, %479 : vector<32x128xf32>
    %481 = vector.broadcast %463 : f32 to vector<32x128xf32>
    %482 = arith.mulf %481, %14 : vector<32x128xf32>
    %483 = vector.broadcast %465 : f32 to vector<32x128xf32>
    %484 = arith.mulf %483, %9 : vector<32x128xf32>
    %485 = arith.addf %482, %484 : vector<32x128xf32>
    %486 = vector.broadcast %467 : f32 to vector<32x128xf32>
    %487 = arith.addf %485, %486 : vector<32x128xf32>
    %488 = vector.broadcast %469 : f32 to vector<32x128xf32>
    %489 = arith.mulf %488, %14 : vector<32x128xf32>
    %490 = vector.broadcast %471 : f32 to vector<32x128xf32>
    %491 = arith.mulf %490, %9 : vector<32x128xf32>
    %492 = arith.addf %489, %491 : vector<32x128xf32>
    %493 = vector.broadcast %473 : f32 to vector<32x128xf32>
    %494 = arith.addf %492, %493 : vector<32x128xf32>
    %495 = arith.minimumf %480, %487 : vector<32x128xf32>
    %496 = arith.minimumf %495, %494 : vector<32x128xf32>
    %cst_11 = arith.constant 0.000000e+00 : f32
    %497 = vector.broadcast %cst_11 : f32 to vector<32x128xf32>
    %498 = arith.cmpf oge, %496, %497 : vector<32x128xf32>
    %499 = arith.ori %455, %498 : vector<32x128xi1>
    %500 = arith.index_cast %arg0 : i32 to index
    %c99 = arith.constant 99 : index
    %501 = memref.load %arg1[%500, %c99] : memref<1x108xf32, #tpu.memory_space<smem>>
    %502 = arith.index_cast %arg0 : i32 to index
    %c100 = arith.constant 100 : index
    %503 = memref.load %arg1[%502, %c100] : memref<1x108xf32, #tpu.memory_space<smem>>
    %504 = arith.index_cast %arg0 : i32 to index
    %c101 = arith.constant 101 : index
    %505 = memref.load %arg1[%504, %c101] : memref<1x108xf32, #tpu.memory_space<smem>>
    %506 = arith.index_cast %arg0 : i32 to index
    %c102 = arith.constant 102 : index
    %507 = memref.load %arg1[%506, %c102] : memref<1x108xf32, #tpu.memory_space<smem>>
    %508 = arith.index_cast %arg0 : i32 to index
    %c103 = arith.constant 103 : index
    %509 = memref.load %arg1[%508, %c103] : memref<1x108xf32, #tpu.memory_space<smem>>
    %510 = arith.index_cast %arg0 : i32 to index
    %c104 = arith.constant 104 : index
    %511 = memref.load %arg1[%510, %c104] : memref<1x108xf32, #tpu.memory_space<smem>>
    %512 = arith.index_cast %arg0 : i32 to index
    %c105 = arith.constant 105 : index
    %513 = memref.load %arg1[%512, %c105] : memref<1x108xf32, #tpu.memory_space<smem>>
    %514 = arith.index_cast %arg0 : i32 to index
    %c106 = arith.constant 106 : index
    %515 = memref.load %arg1[%514, %c106] : memref<1x108xf32, #tpu.memory_space<smem>>
    %516 = arith.index_cast %arg0 : i32 to index
    %c107 = arith.constant 107 : index
    %517 = memref.load %arg1[%516, %c107] : memref<1x108xf32, #tpu.memory_space<smem>>
    %518 = vector.broadcast %501 : f32 to vector<32x128xf32>
    %519 = arith.mulf %518, %14 : vector<32x128xf32>
    %520 = vector.broadcast %503 : f32 to vector<32x128xf32>
    %521 = arith.mulf %520, %9 : vector<32x128xf32>
    %522 = arith.addf %519, %521 : vector<32x128xf32>
    %523 = vector.broadcast %505 : f32 to vector<32x128xf32>
    %524 = arith.addf %522, %523 : vector<32x128xf32>
    %525 = vector.broadcast %507 : f32 to vector<32x128xf32>
    %526 = arith.mulf %525, %14 : vector<32x128xf32>
    %527 = vector.broadcast %509 : f32 to vector<32x128xf32>
    %528 = arith.mulf %527, %9 : vector<32x128xf32>
    %529 = arith.addf %526, %528 : vector<32x128xf32>
    %530 = vector.broadcast %511 : f32 to vector<32x128xf32>
    %531 = arith.addf %529, %530 : vector<32x128xf32>
    %532 = vector.broadcast %513 : f32 to vector<32x128xf32>
    %533 = arith.mulf %532, %14 : vector<32x128xf32>
    %534 = vector.broadcast %515 : f32 to vector<32x128xf32>
    %535 = arith.mulf %534, %9 : vector<32x128xf32>
    %536 = arith.addf %533, %535 : vector<32x128xf32>
    %537 = vector.broadcast %517 : f32 to vector<32x128xf32>
    %538 = arith.addf %536, %537 : vector<32x128xf32>
    %539 = arith.minimumf %524, %531 : vector<32x128xf32>
    %540 = arith.minimumf %539, %538 : vector<32x128xf32>
    %cst_12 = arith.constant 0.000000e+00 : f32
    %541 = vector.broadcast %cst_12 : f32 to vector<32x128xf32>
    %542 = arith.cmpf oge, %540, %541 : vector<32x128xf32>
    %543 = arith.ori %499, %542 : vector<32x128xi1>
    %544 = arith.extui %543 : vector<32x128xi1> to vector<32x128xi32>
    %545 = arith.sitofp %544 : vector<32x128xi32> to vector<32x128xf32>
    tpu.wait_dma2 semaphore(%arg5 : memref<!tpu.dma_semaphore, #tpu.memory_space<semaphore_mem>>) src(%arg2 : memref<32x128xf32, #tpu.memory_space<any>>) dst(%arg4 : memref<32x128xf32, #tpu.memory_space<vmem>>)
    %c0_13 = arith.constant 0 : index
    %c0_14 = arith.constant 0 : index
    %546 = vector.load %arg4[%c0_13, %c0_14] : memref<32x128xf32, #tpu.memory_space<vmem>>, vector<32x128xf32>
    %547 = arith.subf %545, %546 : vector<32x128xf32>
    %548 = arith.mulf %547, %547 : vector<32x128xf32>
    %549 = vector.shape_cast %548 : vector<32x128xf32> to vector<1x32x128xf32>
    %cst_15 = arith.constant dense<0.000000e+00> : vector<1xf32>
    %550 = vector.multi_reduction <add>, %549, %cst_15 [1, 2] : vector<1x32x128xf32> to vector<1xf32>
    %551 = vector.shape_cast %550 : vector<1xf32> to vector<1x1x1xf32>
    %552 = vector.extract %551[0, 0, 0] : f32 from vector<1x1x1xf32>
    %cst_16 = arith.constant 0.000000e+00 : f32
    %553 = vector.broadcast %cst_16 : f32 to vector<1x128xf32>
    %554 = vector.broadcast %552 : f32 to vector<1x128xf32>
    %555 = arith.addf %553, %554 : vector<1x128xf32>
    %c0_17 = arith.constant 0 : index
    %c0_18 = arith.constant 0 : index
    %556 = vector.load %arg3[%c0_17, %c0_18] : memref<1x128xf32, #tpu.memory_space<vmem>>, vector<1x128xf32>
    tpu.vector_store %arg3[%c0_17, %c0_18], %555 {strides = array<i32>} : memref<1x128xf32, #tpu.memory_space<vmem>>, vector<1x128xf32>,
    return
  }
  func.func @transform_1(%arg0: i32, %arg1: memref<1x108xf32, #tpu.memory_space<smem>>) -> (i32, i32) {
    %c0_i32 = arith.constant 0 : i32
    %c0_i32_0 = arith.constant 0 : i32
    return %arg0, %c0_i32 : i32, i32
  }
}

</mosaic_0001>

<bundles_post_ra>
// kernel: silhouette_forward.1
= control target key start
LH: loop header
LB: loop body
LE: loop exit
PB: predicated region body
PF: predicated region fallthrough
CT: control target
= control target key end

     0   :  { %s2414_s0 = inlined_call_operand.vmem [shape: f32[1,108], index: 0, kind: input, shape index: {}]   ;;  %s2415_s1 = inlined_call_operand.vmem [shape: f32[32,128], index: 1, kind: input, shape index: {}]   ;;  %s2416_s2 = inlined_call_operand.hbm [shape: f32[1,128], index: 2, kind: output, shape index: {}]  }
   0x1   :  { %s7_s11 = sshll.u32 %s2414_s0, 4  ;;  %s8_s11 = int_to_ptr.vmem [resolvable:$true] %s7_s11 }
   0x2   :  { %s1252_s12 = scalar_lea.vmem %s8_s11, 16  ;;  %p1257_p1 = scmp.lt.s32.totalorder %s8_s11, %s8_s11 }
   0x3   :  { %p1253_p0 = scmp.ne.s32.totalorder %s8_s11, %s1252_s12  ;;  %p1258_p2 = scmp.lt.s32.totalorder %s1252_s12, %s1252_s12 }
   0x5   :  { %p1259_p3 = por %p1258_p2, %p1257_p1 }
   0x7   :  { %p1260_p4 = pnand %p1259_p3, %p1253_p0 }
   0x9   :  { %1263 = shalt.err (!%p1260_p4)  }
   0xa   :  { %s1292_s13 = smov [#allocation5]  }
   0xb   :  { %10 = dma.vmem_to_smem %s8_s11, 16, %s1292_s13, [#allocation4] }
   0xc   :  { %1286 = dma.done.wait [#allocation4], 16 }
   0xd   :  { %1287 = vsyncadd [#allocation4], 4294967280 }
   0xe   :  { %12 = sfence }
   0xf   :  { %13 = vsyncpa [#allocation7], 0  ;;  %v1316_v0 = vld [vmem:[%s2415_s1] sm:$0xff]  ;;  %v1321_v1 = vld [vmem:[%s2415_s1 + $0x8] sm:$0xff] }
  0x10   :  { %2422 = vst [vmem:[#allocation12_spill] sm:$0xff] %v1316_v0  ;;  %2423 = vst [vmem:[#allocation13_spill] sm:$0xff] %v1321_v1  ;;  %v1326_v2 = vld [vmem:[%s2415_s1 + $0x10] sm:$0xff]  ;;  %v1331_v3 = vld [vmem:[%s2415_s1 + $0x18] sm:$0xff] }
  0x11   :  { %2424 = vst [vmem:[#allocation14_spill] sm:$0xff] %v1326_v2  ;;  %2425 = vst [vmem:[#allocation15_spill] sm:$0xff] %v1331_v3 }
  0x12   :  { %61 = vsyncadd [#allocation3], 512  ;;  %v62_v4 = vlaneseq  ;;  %s90_s21 = sld [smem:[#allocation5]]  ;;  %s1135_s22 = sld [smem:[#allocation5 + $0x1]] }
  0x13   :  { %s1137_s1 = sld [smem:[#allocation5 + $0x3]]  ;;  %s1138_s23 = sld [smem:[#allocation5 + $0x4]] }
  0x14   :  { %v63_v5 = vshrl.u32 %v62_v4, 7  ;;  %v68_v6 = vand.u32 127, %v62_v4  ;;  %s1136_s24 = sld [smem:[#allocation5 + $0x2]]  ;;  %s1337_s25 = sld [smem:[#allocation5 + $0x6]] }
  0x15   :  { %s1141_s26 = sld [smem:[#allocation5 + $0x7]]  ;;  %s1139_s27 = sld [smem:[#allocation5 + $0x5]] }
  0x16   :  { %v64_v7 = vadd.s32 8, %v63_v5  ;;  %v65_v8 = vadd.s32 16, %v63_v5  ;;  %v66_v9 = vadd.s32 24, %v63_v5  ;;  %v69_v10 = vmul.u32 2, %v63_v5  ;;  %s1353_s28 = sld [smem:[#allocation5 + $0x9]]  ;;  %s1355_s29 = sld [smem:[#allocation5 + $0xa]] }
  0x17   :  { %v73_v11 = vshra.s32 %v68_v6, 6  ;;  %v86_v16 = vand.u32 63, %v68_v6  ;;  %s1357_s30 = sld [smem:[#allocation5 + $0x8]]  ;;  %s1362_s3 = sld [smem:[#allocation5 + $0xc]] }
  0x18   :  { %v70_v12 = vmul.u32 2, %v64_v7  ;;  %v71_v13 = vmul.u32 2, %v65_v8  ;;  %v107_v27 = vstv %s90_s21  ;;  %v109_v30 = vstv %s1135_s22  ;;  %s1364_s4 = sld [smem:[#allocation5 + $0xd]]  ;;  %s1372_s5 = sld [smem:[#allocation5 + $0xf]] }
  0x19   :  { %v72_v14 = vmul.u32 2, %v66_v9  ;;  %v74_v15 = vadd.s32 %v73_v11, %v69_v10  ;;  %v87_v21 = vcvt.s32.f32 %v86_v16  ;;  %v123_v31 = vstv %s1137_s1  ;;  %s1374_s6 = sld [smem:[#allocation5 + $0x10]]  ;;  %s1379_s7 = sld [smem:[#allocation5 + $0xb]] }
  0x1a   :  { %v75_v17 = vadd.s32 %v73_v11, %v70_v12  ;;  %v76_v18 = vadd.s32 %v73_v11, %v71_v13  ;;  %v125_v32 = vstv %s1138_s23  ;;  %v118_v45 = vstv %s1136_s24  ;;  %s1388_s8 = sld [smem:[#allocation5 + $0xe]]  ;;  %s1404_s9 = sld [smem:[#allocation5 + $0x12]] }
  0x1b   :  { %v77_v19 = vadd.s32 %v73_v11, %v72_v14  ;;  %v78_v20 = vcvt.s32.f32 %v74_v15  ;;  %v1335_v26 = vadd.f32 0.5, %v87_v21  ;;  %v139_v46 = vstv %s1337_s25  ;;  %s1406_s10 = sld [smem:[#allocation5 + $0x13]]  ;;  %s1408_s11 = sld [smem:[#allocation5 + $0x11]] }
  0x1c   :  { %v79_v22 = vcvt.s32.f32 %v75_v17  ;;  %v80_v23 = vcvt.s32.f32 %v76_v18  ;;  %v141_v47 = vstv %s1141_s26  ;;  %v134_v53 = vstv %s1139_s27  ;;  %s1415_s12 = sld [smem:[#allocation5 + $0x15]]  ;;  %s1417_s13 = sld [smem:[#allocation5 + $0x16]] }
  0x1d   :  { %v81_v24 = vcvt.s32.f32 %v77_v19  ;;  %v1333_v25 = vadd.f32 0.5, %v78_v20  ;;  %v108_v34 = vmul.f32 %v107_v27, %v1335_v26  ;;  %v124_v36 = vmul.f32 %v123_v31, %v1335_v26  ;;  %s1429_s14 = sld [smem:[#allocation5 + $0x14]]  ;;  %s1431_s15 = sld [smem:[#allocation5 + $0x18]] }
  0x1e   :  { %v1339_v28 = vadd.f32 0.5, %v79_v22  ;;  %v1341_v29 = vadd.f32 0.5, %v80_v23  ;;  %v140_v56 = vmul.f32 %v139_v46, %v1335_v26  ;;  %v185_v7 = vstv %s1353_s28  ;;  %s1440_s0 = sld [smem:[#allocation5 + $0x19]]  ;;  %s1442_s16 = sld [smem:[#allocation5 + $0x17]] }
  0x1f   :  { %v1343_v33 = vadd.f32 0.5, %v81_v24  ;;  %v110_v35 = vmul.f32 %v109_v30, %v1333_v25  ;;  %v126_v39 = vmul.f32 %v125_v32, %v1333_v25  ;;  %v142_v57 = vmul.f32 %v141_v47, %v1333_v25  ;;  %s1448_s17 = sld [smem:[#allocation5 + $0x1a]]  ;;  %s1456_s18 = sld [smem:[#allocation5 + $0x1b]] }
  0x20   :  { %v111_v37 = vmul.f32 %v109_v30, %v1339_v28  ;;  %v112_v38 = vmul.f32 %v109_v30, %v1341_v29  ;;  %v127_v40 = vmul.f32 %v125_v32, %v1339_v28  ;;  %v128_v41 = vmul.f32 %v125_v32, %v1341_v29  ;;  %s1458_s19 = sld [smem:[#allocation5 + $0x1c]]  ;;  %s1462_s20 = sld [smem:[#allocation5 + $0x1e]] }
  0x21   :  { %v113_v42 = vmul.f32 %v109_v30, %v1343_v33  ;;  %v129_v43 = vmul.f32 %v125_v32, %v1343_v33  ;;  %v114_v44 = vadd.f32 %v110_v35, %v108_v34  ;;  %v130_v50 = vadd.f32 %v126_v39, %v124_v36  ;;  %s1464_s21 = sld [smem:[#allocation5 + $0x1f]]  ;;  %s1484_s22 = sld [smem:[#allocation5 + $0x1d]] }
  0x22   :  { %v115_v48 = vadd.f32 %v111_v37, %v108_v34  ;;  %v116_v49 = vadd.f32 %v112_v38, %v108_v34  ;;  %v131_v51 = vadd.f32 %v127_v40, %v124_v36  ;;  %v132_v52 = vadd.f32 %v128_v41, %v124_v36  ;;  %s1487_s1 = sld [smem:[#allocation5 + $0x21]]  ;;  %s1489_s23 = sld [smem:[#allocation5 + $0x22]] }
  0x23   :  { %v117_v54 = vadd.f32 %v113_v42, %v108_v34  ;;  %v133_v55 = vadd.f32 %v129_v43, %v124_v36  ;;  %v119_v58 = vadd.f32 %v118_v45, %v114_v44  ;;  %v143_v59 = vmul.f32 %v141_v47, %v1339_v28  ;;  %s1497_s24 = sld [smem:[#allocation5 + $0x20]]  ;;  %s1513_s25 = sld [smem:[#allocation5 + $0x23]] }
  0x24   :  { %v144_v60 = vmul.f32 %v141_v47, %v1341_v29  ;;  %v120_v61 = vadd.f32 %v118_v45, %v115_v48  ;;  %v1370_v62 = vadd.f32 %v118_v45, %v116_v49  ;;  %v135_v63 = vadd.f32 %v134_v53, %v130_v50  ;;  %s1519_s26 = sld [smem:[#allocation5 + $0x24]]  ;;  %s1522_s27 = sld [smem:[#allocation5 + $0x25]] }
  0x25   :  { %v136_v4 = vadd.f32 %v134_v53, %v131_v51  ;;  %v1376_v5 = vadd.f32 %v134_v53, %v132_v52  ;;  %v145_v6 = vmul.f32 %v141_v47, %v1343_v33  ;;  %v187_v8 = vstv %s1355_s29  ;;  %s1525_s28 = sld [smem:[#allocation5 + $0x27]]  ;;  %s1527_s29 = sld [smem:[#allocation5 + $0x28]] }
  0x26   :  { %v1383_v9 = vadd.f32 %v118_v45, %v117_v54  ;;  %v1385_v10 = vadd.f32 %v134_v53, %v133_v55  ;;  %v146_v11 = vadd.f32 %v142_v57, %v140_v56  ;;  %v150_v12 = vstv %s1357_s30  ;;  %s1538_s30 = sld [smem:[#allocation5 + $0x26]] }
  0x27   :  { %v147_v13 = vadd.f32 %v143_v59, %v140_v56  ;;  %v148_v14 = vadd.f32 %v144_v60, %v140_v56  ;;  %v201_v15 = vstv %s1362_s3  ;;  %v203_v16 = vstv %s1364_s4  ;;  %s1542_s3 = sld [smem:[#allocation5 + $0x2a]]  ;;  %s1544_s4 = sld [smem:[#allocation5 + $0x2b]] }
  0x28   :  { %v155_v17 = vmin.f32 %v119_v58, %v135_v63  ;;  %v156_v18 = vmin.f32 %v120_v61, %v136_v4  ;;  %v186_v19 = vmul.f32 %v185_v7, %v1335_v26  ;;  %v188_v20 = vmul.f32 %v187_v8, %v1333_v25 }
  0x29   :  { %v149_v21 = vadd.f32 %v145_v6, %v140_v56  ;;  %v157_v22 = vmin.f32 %v1370_v62, %v1376_v5  ;;  %v189_v23 = vmul.f32 %v187_v8, %v1339_v28  ;;  %v190_v24 = vmul.f32 %v187_v8, %v1341_v29 }
  0x2a   :  { %v202_v27 = vmul.f32 %v201_v15, %v1335_v26  ;;  %v204_v30 = vmul.f32 %v203_v16, %v1333_v25  ;;  %v205_v31 = vmul.f32 %v203_v16, %v1339_v28  ;;  %v206_v32 = vmul.f32 %v203_v16, %v1341_v29 }
  0x2b   :  { %v151_v34 = vadd.f32 %v150_v12, %v146_v11  ;;  %v152_v35 = vadd.f32 %v150_v12, %v147_v13  ;;  %v153_v36 = vadd.f32 %v150_v12, %v148_v14  ;;  %v158_v37 = vmin.f32 %v1383_v9, %v1385_v10 }
  0x2c   :  { %v191_v38 = vmul.f32 %v187_v8, %v1343_v33  ;;  %v192_v39 = vadd.f32 %v188_v20, %v186_v19  ;;  %v217_v40 = vstv %s1372_s5  ;;  %v219_v41 = vstv %s1374_s6  ;;  %s1551_s5 = sld [smem:[#allocation5 + $0x29]]  ;;  %s1560_s6 = sld [smem:[#allocation5 + $0x2d]] }
  0x2d   :  { %v193_v42 = vadd.f32 %v189_v23, %v186_v19  ;;  %v194_v43 = vadd.f32 %v190_v24, %v186_v19  ;;  %v196_v44 = vstv %s1379_s7  ;;  %v207_v45 = vmul.f32 %v203_v16, %v1343_v33  ;;  %s1566_s7 = sld [smem:[#allocation5 + $0x2e]] }
  0x2e   :  { %v154_v46 = vadd.f32 %v150_v12, %v149_v21  ;;  %v208_v47 = vadd.f32 %v204_v30, %v202_v27  ;;  %v209_v48 = vadd.f32 %v205_v31, %v202_v27  ;;  %v210_v49 = vadd.f32 %v206_v32, %v202_v27 }
  0x2f   :  { %v212_v50 = vstv %s1388_s8  ;;  %v218_v51 = vmul.f32 %v217_v40, %v1335_v26  ;;  %v220_v52 = vmul.f32 %v219_v41, %v1333_v25  ;;  %v221_v53 = vmul.f32 %v219_v41, %v1339_v28  ;;  %s1568_s8 = sld [smem:[#allocation5 + $0x2c]] }
  0x30   :  { %v1423_v54 = vmin.f32 %v155_v17, %v151_v34  ;;  %v1425_v55 = vmin.f32 %v156_v18, %v152_v35  ;;  %v195_v56 = vadd.f32 %v191_v38, %v186_v19  ;;  %v197_v57 = vadd.f32 %v196_v44, %v192_v39 }
  0x31   :  { %v198_v58 = vadd.f32 %v196_v44, %v193_v42  ;;  %v199_v59 = vadd.f32 %v196_v44, %v194_v43  ;;  %v211_v60 = vadd.f32 %v207_v45, %v202_v27  ;;  %v222_v61 = vmul.f32 %v219_v41, %v1341_v29 }
  0x32   :  { %v213_v62 = vadd.f32 %v212_v50, %v208_v47  ;;  %v214_v63 = vadd.f32 %v212_v50, %v209_v48  ;;  %v215_v4 = vadd.f32 %v212_v50, %v210_v49  ;;  %v223_v5 = vmul.f32 %v219_v41, %v1343_v33 }
  0x33   :  { %v224_v6 = vadd.f32 %v220_v52, %v218_v51  ;;  %v225_v7 = vadd.f32 %v221_v53, %v218_v51  ;;  %v267_v8 = vstv %s1404_s9  ;;  %v269_v9 = vstv %s1406_s10  ;;  %s1580_s9 = sld [smem:[#allocation5 + $0x30]]  ;;  %s1582_s10 = sld [smem:[#allocation5 + $0x31]] }
  0x34   :  { %v1435_v10 = vmin.f32 %v157_v22, %v153_v36  ;;  %v1437_v11 = vmin.f32 %v158_v37, %v154_v46  ;;  %v200_v12 = vadd.f32 %v196_v44, %v195_v56  ;;  %v228_v13 = vstv %s1408_s11  ;;  %s1594_s11 = sld [smem:[#allocation5 + $0x2f]] }
  0x35   :  { %v216_v14 = vadd.f32 %v212_v50, %v211_v60  ;;  %v226_v15 = vadd.f32 %v222_v61, %v218_v51  ;;  %v283_v16 = vstv %s1415_s12  ;;  %v285_v17 = vstv %s1417_s13  ;;  %s1599_s12 = sld [smem:[#allocation5 + $0x33]]  ;;  %s1601_s13 = sld [smem:[#allocation5 + $0x34]] }
  0x36   :  { %v227_v18 = vadd.f32 %v223_v5, %v218_v51  ;;  %v233_v19 = vmin.f32 %v197_v57, %v213_v62  ;;  %v268_v20 = vmul.f32 %v267_v8, %v1335_v26  ;;  %v270_v21 = vmul.f32 %v269_v9, %v1333_v25 }
  0x37   :  { %v229_v22 = vadd.f32 %v228_v13, %v224_v6  ;;  %v230_v23 = vadd.f32 %v228_v13, %v225_v7  ;;  %v234_v24 = vmin.f32 %v198_v58, %v214_v63  ;;  %v235_v27 = vmin.f32 %v199_v59, %v215_v4 }
  0x38   :  { %v271_v30 = vmul.f32 %v269_v9, %v1339_v28  ;;  %v284_v31 = vmul.f32 %v283_v16, %v1335_v26  ;;  %v286_v32 = vmul.f32 %v285_v17, %v1333_v25  ;;  %v287_v34 = vmul.f32 %v285_v17, %v1339_v28 }
  0x39   :  { %v231_v35 = vadd.f32 %v228_v13, %v226_v15  ;;  %v236_v36 = vmin.f32 %v200_v12, %v216_v14  ;;  %v272_v37 = vmul.f32 %v269_v9, %v1341_v29  ;;  %v273_v38 = vmul.f32 %v269_v9, %v1343_v33 }
  0x3a   :  { %v232_v39 = vadd.f32 %v228_v13, %v227_v18  ;;  %v274_v40 = vadd.f32 %v270_v21, %v268_v20  ;;  %v278_v41 = vstv %s1429_s14  ;;  %v288_v42 = vmul.f32 %v285_v17, %v1341_v29  ;;  %s1607_s14 = sld [smem:[#allocation5 + $0x32]] }
  0x3b   :  { %v1466_v43 = vmin.f32 %v233_v19, %v229_v22  ;;  %v1468_v44 = vmin.f32 %v234_v24, %v230_v23  ;;  %v289_v45 = vmul.f32 %v285_v17, %v1343_v33  ;;  %v299_v46 = vstv %s1431_s15  ;;  %s1622_s15 = sld [smem:[#allocation5 + $0x36]] }
  0x3c   :  { %v275_v47 = vadd.f32 %v271_v30, %v268_v20  ;;  %v290_v48 = vadd.f32 %v286_v32, %v284_v31  ;;  %v291_v49 = vadd.f32 %v287_v34, %v284_v31  ;;  %v301_v50 = vstv %s1440_s0  ;;  %s1624_s0 = sld [smem:[#allocation5 + $0x37]] }
  0x3d   :  { %v1473_v51 = vmin.f32 %v235_v27, %v231_v35  ;;  %v276_v52 = vadd.f32 %v272_v37, %v268_v20  ;;  %v277_v53 = vadd.f32 %v273_v38, %v268_v20  ;;  %v294_v56 = vstv %s1442_s16  ;;  %s1628_s16 = sld [smem:[#allocation5 + $0x35]] }
  0x3e   :  { %v1476_v57 = vmin.f32 %v236_v36, %v232_v39  ;;  %v1478_v58 = vadd.f32 %v278_v41, %v274_v40  ;;  %v292_v59 = vadd.f32 %v288_v42, %v284_v31  ;;  %v300_v60 = vmul.f32 %v299_v46, %v1335_v26 }
  0x3f   :  { %v293_v61 = vadd.f32 %v289_v45, %v284_v31  ;;  %v302_v62 = vmul.f32 %v301_v50, %v1333_v25  ;;  %v303_v63 = vmul.f32 %v301_v50, %v1339_v28  ;;  %v304_v4 = vmul.f32 %v301_v50, %v1341_v29 }
  0x40   :  { %v280_v5 = vadd.f32 %v278_v41, %v275_v47  ;;  %v295_v6 = vadd.f32 %v294_v56, %v290_v48  ;;  %v296_v7 = vadd.f32 %v294_v56, %v291_v49  ;;  %v305_v8 = vmul.f32 %v301_v50, %v1343_v33 }
  0x41   :  { %v1491_v9 = vadd.f32 %v278_v41, %v276_v52  ;;  %v1493_v12 = vadd.f32 %v278_v41, %v277_v53  ;;  %v310_v13 = vstv %s1448_s17  ;;  %v349_v14 = vstv %s1456_s18  ;;  %s1638_s17 = sld [smem:[#allocation5 + $0x39]]  ;;  %s1640_s18 = sld [smem:[#allocation5 + $0x3a]] }
  0x42   :  { %v297_v15 = vadd.f32 %v294_v56, %v292_v59  ;;  %v351_v16 = vstv %s1458_s19  ;;  %v365_v17 = vstv %s1462_s20  ;;  %v367_v18 = vstv %s1464_s21  ;;  %s1647_s19 = sld [smem:[#allocation5 + $0x38]]  ;;  %s1649_s20 = sld [smem:[#allocation5 + $0x3c]] }
  0x43   :  { %v298_v19 = vadd.f32 %v294_v56, %v293_v61  ;;  %v306_v20 = vadd.f32 %v302_v62, %v300_v60  ;;  %v307_v21 = vadd.f32 %v303_v63, %v300_v60  ;;  %v308_v22 = vadd.f32 %v304_v4, %v300_v60  ;;  %s1651_s21 = sld [smem:[#allocation5 + $0x3d]] }
  0x44   :  { %v309_v23 = vadd.f32 %v305_v8, %v300_v60  ;;  %v315_v24 = vmin.f32 %v1478_v58, %v295_v6  ;;  %v316_v27 = vmin.f32 %v280_v5, %v296_v7  ;;  %v350_v30 = vmul.f32 %v349_v14, %v1335_v26 }
  0x45   :  { %v352_v31 = vmul.f32 %v351_v16, %v1333_v25  ;;  %v353_v32 = vmul.f32 %v351_v16, %v1339_v28  ;;  %v366_v34 = vmul.f32 %v365_v17, %v1335_v26  ;;  %v368_v35 = vmul.f32 %v367_v18, %v1333_v25 }
  0x46   :  { %v317_v36 = vmin.f32 %v1491_v9, %v297_v15  ;;  %v354_v37 = vmul.f32 %v351_v16, %v1341_v29  ;;  %v369_v38 = vmul.f32 %v367_v18, %v1339_v28  ;;  %v370_v39 = vmul.f32 %v367_v18, %v1341_v29 }
  0x47   :  { %v311_v40 = vadd.f32 %v310_v13, %v306_v20  ;;  %v312_v41 = vadd.f32 %v310_v13, %v307_v21  ;;  %v313_v42 = vadd.f32 %v310_v13, %v308_v22  ;;  %v318_v45 = vmin.f32 %v1493_v12, %v298_v19 }
  0x48   :  { %v355_v46 = vmul.f32 %v351_v16, %v1343_v33  ;;  %v360_v47 = vstv %s1484_s22  ;;  %v381_v48 = vstv %s1487_s1  ;;  %v383_v49 = vstv %s1489_s23  ;;  %s1662_s22 = sld [smem:[#allocation5 + $0x3b]]  ;;  %s1675_s1 = sld [smem:[#allocation5 + $0x3f]] }
  0x49   :  { %v356_v50 = vadd.f32 %v352_v31, %v350_v30  ;;  %v357_v52 = vadd.f32 %v353_v32, %v350_v30  ;;  %v371_v53 = vmul.f32 %v367_v18, %v1343_v33  ;;  %v372_v56 = vadd.f32 %v368_v35, %v366_v34  ;;  %s1677_s23 = sld [smem:[#allocation5 + $0x40]] }
  0x4a   :  { %v358_v58 = vadd.f32 %v354_v37, %v350_v30  ;;  %v373_v59 = vadd.f32 %v369_v38, %v366_v34  ;;  %v374_v60 = vadd.f32 %v370_v39, %v366_v34  ;;  %v376_v61 = vstv %s1497_s24  ;;  %s1679_s24 = sld [smem:[#allocation5 + $0x3e]] }
  0x4b   :  { %v382_v62 = vmul.f32 %v381_v48, %v1335_v26  ;;  %v384_v63 = vmul.f32 %v383_v49, %v1333_v25  ;;  %v385_v4 = vmul.f32 %v383_v49, %v1339_v28  ;;  %v386_v5 = vmul.f32 %v383_v49, %v1341_v29 }
  0x4c   :  { %v314_v6 = vadd.f32 %v310_v13, %v309_v23  ;;  %v1533_v7 = vmin.f32 %v315_v24, %v311_v40  ;;  %v1535_v8 = vmin.f32 %v316_v27, %v312_v41  ;;  %v359_v9 = vadd.f32 %v355_v46, %v350_v30 }
  0x4d   :  { %v361_v12 = vadd.f32 %v360_v47, %v356_v50  ;;  %v375_v14 = vadd.f32 %v371_v53, %v366_v34  ;;  %v377_v15 = vadd.f32 %v376_v61, %v372_v56  ;;  %v387_v16 = vmul.f32 %v383_v49, %v1343_v33 }
  0x4e   :  { %v362_v17 = vadd.f32 %v360_v47, %v357_v52  ;;  %v363_v18 = vadd.f32 %v360_v47, %v358_v58  ;;  %v378_v19 = vadd.f32 %v376_v61, %v373_v59  ;;  %v379_v20 = vadd.f32 %v376_v61, %v374_v60 }
  0x4f   :  { %v1540_v13 = vmin.f32 %v317_v36, %v313_v42  ;;  %v388_v21 = vadd.f32 %v384_v63, %v382_v62  ;;  %v389_v22 = vadd.f32 %v385_v4, %v382_v62  ;;  %v390_v23 = vadd.f32 %v386_v5, %v382_v62 }
  0x50   :  { %v1546_v24 = vmin.f32 %v318_v45, %v314_v6  ;;  %v364_v27 = vadd.f32 %v360_v47, %v359_v9  ;;  %v392_v30 = vstv %s1513_s25  ;;  %v431_v31 = vstv %s1519_s26  ;;  %s1697_s25 = sld [smem:[#allocation5 + $0x42]]  ;;  %s1699_s26 = sld [smem:[#allocation5 + $0x43]] }
  0x51   :  { %v380_v32 = vadd.f32 %v376_v61, %v375_v14  ;;  %v391_v34 = vadd.f32 %v387_v16, %v382_v62  ;;  %v397_v35 = vmin.f32 %v361_v12, %v377_v15  ;;  %v433_v37 = vstv %s1522_s27  ;;  %s1707_s27 = sld [smem:[#allocation5 + $0x41]] }
  0x52   :  { %v398_v36 = vmin.f32 %v362_v17, %v378_v19  ;;  %v399_v38 = vmin.f32 %v363_v18, %v379_v20  ;;  %v447_v39 = vstv %s1525_s28  ;;  %v449_v40 = vstv %s1527_s29  ;;  %s1714_s28 = sld [smem:[#allocation5 + $0x45]]  ;;  %s1716_s29 = sld [smem:[#allocation5 + $0x46]] }
  0x53   :  { %v393_v41 = vadd.f32 %v392_v30, %v388_v21  ;;  %v394_v42 = vadd.f32 %v392_v30, %v389_v22  ;;  %v395_v46 = vadd.f32 %v392_v30, %v390_v23  ;;  %v432_v45 = vmul.f32 %v431_v31, %v1335_v26 }
  0x54   :  { %v434_v47 = vmul.f32 %v433_v37, %v1333_v25  ;;  %v435_v48 = vmul.f32 %v433_v37, %v1339_v28  ;;  %v436_v49 = vmul.f32 %v433_v37, %v1341_v29  ;;  %v437_v50 = vmul.f32 %v433_v37, %v1343_v33 }
  0x55   :  { %v448_v52 = vmul.f32 %v447_v39, %v1335_v26  ;;  %v450_v53 = vmul.f32 %v449_v40, %v1333_v25  ;;  %v451_v56 = vmul.f32 %v449_v40, %v1339_v28  ;;  %v452_v58 = vmul.f32 %v449_v40, %v1341_v29 }
  0x56   :  { %v396_v59 = vadd.f32 %v392_v30, %v391_v34  ;;  %v400_v60 = vmin.f32 %v364_v27, %v380_v32  ;;  %v442_v61 = vstv %s1538_s30  ;;  %v453_v62 = vmul.f32 %v449_v40, %v1343_v33  ;;  %s1723_s30 = sld [smem:[#allocation5 + $0x44]] }
  0x57   :  { %v1572_v63 = vmin.f32 %v397_v35, %v393_v41  ;;  %v1574_v4 = vmin.f32 %v398_v36, %v394_v42  ;;  %v463_v5 = vstv %s1542_s3  ;;  %v465_v6 = vstv %s1544_s4  ;;  %s1739_s3 = sld [smem:[#allocation5 + $0x47]]  ;;  %s1748_s4 = sld [smem:[#allocation5 + $0x48]] }
  0x58   :  { %v1578_v9 = vmin.f32 %v399_v38, %v395_v46  ;;  %v438_v12 = vadd.f32 %v434_v47, %v432_v45  ;;  %v439_v14 = vadd.f32 %v435_v48, %v432_v45  ;;  %v440_v15 = vadd.f32 %v436_v49, %v432_v45 }
  0x59   :  { %v441_v16 = vadd.f32 %v437_v50, %v432_v45  ;;  %v454_v17 = vadd.f32 %v450_v53, %v448_v52  ;;  %v455_v18 = vadd.f32 %v451_v56, %v448_v52  ;;  %v456_v19 = vadd.f32 %v452_v58, %v448_v52 }
  0x5a   :  { %v457_v20 = vadd.f32 %v453_v62, %v448_v52  ;;  %v458_v21 = vstv %s1551_s5  ;;  %v464_v22 = vmul.f32 %v463_v5, %v1335_v26  ;;  %v466_v23 = vmul.f32 %v465_v6, %v1333_v25  ;;  %s1750_s5 = sld [smem:[#allocation5 + $0x49]] }
  0x5b   :  { %v1587_v27 = vmin.f32 %v400_v60, %v396_v59  ;;  %v467_v30 = vmul.f32 %v465_v6, %v1339_v28  ;;  %v468_v31 = vmul.f32 %v465_v6, %v1341_v29  ;;  %v469_v32 = vmul.f32 %v465_v6, %v1343_v33 }
  0x5c   :  { %v443_v34 = vadd.f32 %v442_v61, %v438_v12  ;;  %v444_v35 = vadd.f32 %v442_v61, %v439_v14  ;;  %v1592_v37 = vadd.f32 %v442_v61, %v440_v15  ;;  %v513_v36 = vstv %s1560_s6  ;;  %s1763_s6 = sld [smem:[#allocation5 + $0x4a]] }
  0x5d   :  { %v459_v38 = vadd.f32 %v458_v21, %v454_v17  ;;  %v460_v39 = vadd.f32 %v458_v21, %v455_v18  ;;  %v1597_v40 = vadd.f32 %v458_v21, %v456_v19  ;;  %v515_v41 = vstv %s1566_s7  ;;  %s1767_s7 = sld [smem:[#allocation5 + $0x4b]] }
  0x5e   :  { %v1604_v42 = vadd.f32 %v442_v61, %v441_v16  ;;  %v462_v46 = vadd.f32 %v458_v21, %v457_v20  ;;  %v470_v45 = vadd.f32 %v466_v23, %v464_v22  ;;  %v474_v47 = vstv %s1568_s8  ;;  %s1769_s8 = sld [smem:[#allocation5 + $0x4c]] }
  0x5f   :  { %v471_v48 = vadd.f32 %v467_v30, %v464_v22  ;;  %v472_v49 = vadd.f32 %v468_v31, %v464_v22  ;;  %v473_v50 = vadd.f32 %v469_v32, %v464_v22  ;;  %v514_v52 = vmul.f32 %v513_v36, %v1335_v26 }
  0x60   :  { %v516_v53 = vmul.f32 %v515_v41, %v1333_v25  ;;  %v517_v56 = vmul.f32 %v515_v41, %v1339_v28  ;;  %v529_v58 = vstv %s1580_s9  ;;  %v531_v59 = vstv %s1582_s10  ;;  %s1784_s9 = sld [smem:[#allocation5 + $0x4d]]  ;;  %s1786_s10 = sld [smem:[#allocation5 + $0x4e]] }
  0x61   :  { %v479_v60 = vmin.f32 %v443_v34, %v459_v38  ;;  %v480_v62 = vmin.f32 %v444_v35, %v460_v39  ;;  %v481_v61 = vmin.f32 %v1592_v37, %v1597_v40  ;;  %v530_v5 = vmul.f32 %v529_v58, %v1335_v26 }
  0x62   :  { %v518_v6 = vmul.f32 %v515_v41, %v1341_v29  ;;  %v532_v12 = vmul.f32 %v531_v59, %v1333_v25  ;;  %v533_v14 = vmul.f32 %v531_v59, %v1339_v28  ;;  %v534_v15 = vmul.f32 %v531_v59, %v1341_v29 }
  0x63   :  { %v475_v16 = vadd.f32 %v474_v47, %v470_v45  ;;  %v476_v17 = vadd.f32 %v474_v47, %v471_v48  ;;  %v477_v18 = vadd.f32 %v474_v47, %v472_v49  ;;  %v519_v19 = vmul.f32 %v515_v41, %v1343_v33 }
  0x64   :  { %v482_v20 = vmin.f32 %v1604_v42, %v462_v46  ;;  %v520_v21 = vadd.f32 %v516_v53, %v514_v52  ;;  %v521_v22 = vadd.f32 %v517_v56, %v514_v52  ;;  %v524_v23 = vstv %s1594_s11  ;;  %s1788_s11 = sld [smem:[#allocation5 + $0x4f]] }
  0x65   :  { %v535_v30 = vmul.f32 %v531_v59, %v1343_v33  ;;  %v536_v31 = vadd.f32 %v532_v12, %v530_v5  ;;  %v545_v32 = vstv %s1599_s12  ;;  %v547_v34 = vstv %s1601_s13  ;;  %s1811_s12 = sld [smem:[#allocation5 + $0x50]]  ;;  %s1820_s13 = sld [smem:[#allocation5 + $0x51]] }
  0x66   :  { %v522_v35 = vadd.f32 %v518_v6, %v514_v52  ;;  %v537_v37 = vadd.f32 %v533_v14, %v530_v5  ;;  %v538_v36 = vadd.f32 %v534_v15, %v530_v5  ;;  %v540_v38 = vstv %s1607_s14  ;;  %s1822_s14 = sld [smem:[#allocation5 + $0x52]] }
  0x67   :  { %v478_v39 = vadd.f32 %v474_v47, %v473_v50  ;;  %v1634_v40 = vmin.f32 %v479_v60, %v475_v16  ;;  %v1636_v41 = vmin.f32 %v480_v62, %v476_v17  ;;  %v523_v42 = vadd.f32 %v519_v19, %v514_v52 }
  0x68   :  { %v546_v46 = vmul.f32 %v545_v32, %v1335_v26  ;;  %v548_v45 = vmul.f32 %v547_v34, %v1333_v25  ;;  %v549_v48 = vmul.f32 %v547_v34, %v1339_v28  ;;  %v550_v49 = vmul.f32 %v547_v34, %v1341_v29 }
  0x69   :  { %2426 = vst [vmem:[#allocation16_spill] sm:$0xff] %v1636_v41  ;;  %v525_v47 = vadd.f32 %v524_v23, %v520_v21  ;;  %v539_v50 = vadd.f32 %v535_v30, %v530_v5  ;;  %v541_v53 = vadd.f32 %v540_v38, %v536_v31  ;;  %v551_v56 = vmul.f32 %v547_v34, %v1343_v33 }
  0x6a   :  { %v526_v52 = vadd.f32 %v524_v23, %v521_v22  ;;  %v527_v58 = vadd.f32 %v524_v23, %v522_v35  ;;  %v542_v59 = vadd.f32 %v540_v38, %v537_v37  ;;  %v543_v60 = vadd.f32 %v540_v38, %v538_v36 }
  0x6b   :  { %v1653_v62 = vmin.f32 %v481_v61, %v477_v18  ;;  %v1655_v6 = vmin.f32 %v482_v20, %v478_v39  ;;  %v595_v12 = vstv %s1622_s15  ;;  %v597_v5 = vstv %s1624_s0  ;;  %s1832_s15 = sld [smem:[#allocation5 + $0x53]]  ;;  %s1841_s0 = sld [smem:[#allocation5 + $0x54]] }
  0x6c   :  { %v1659_v14 = vadd.f32 %v524_v23, %v523_v42  ;;  %v552_v15 = vadd.f32 %v548_v45, %v546_v46  ;;  %v553_v16 = vadd.f32 %v549_v48, %v546_v46  ;;  %v554_v17 = vadd.f32 %v550_v49, %v546_v46 }
  0x6d   :  { %v544_v19 = vadd.f32 %v540_v38, %v539_v50  ;;  %v555_v21 = vadd.f32 %v551_v56, %v546_v46  ;;  %v556_v22 = vstv %s1628_s16  ;;  %v561_v30 = vmin.f32 %v525_v47, %v541_v53  ;;  %s1849_s16 = sld [smem:[#allocation5 + $0x55]] }
  0x6e   :  { %v562_v31 = vmin.f32 %v526_v52, %v542_v59  ;;  %v563_v61 = vmin.f32 %v527_v58, %v543_v60  ;;  %v596_v18 = vmul.f32 %v595_v12, %v1335_v26  ;;  %v598_v20 = vmul.f32 %v597_v5, %v1333_v25 }
  0x6f   :  { %v599_v32 = vmul.f32 %v597_v5, %v1339_v28  ;;  %v600_v23 = vmul.f32 %v597_v5, %v1341_v29  ;;  %v611_v34 = vstv %s1638_s17  ;;  %v613_v35 = vstv %s1640_s18  ;;  %s1851_s17 = sld [smem:[#allocation5 + $0x56]]  ;;  %s1868_s18 = sld [smem:[#allocation5 + $0x57]] }
  0x70   :  { %v557_v37 = vadd.f32 %v556_v22, %v552_v15  ;;  %v558_v36 = vadd.f32 %v556_v22, %v553_v16  ;;  %v559_v38 = vadd.f32 %v556_v22, %v554_v17  ;;  %v612_v39 = vmul.f32 %v611_v34, %v1335_v26 }
  0x71   :  { %v564_v42 = vmin.f32 %v1659_v14, %v544_v19  ;;  %v614_v46 = vmul.f32 %v613_v35, %v1333_v25  ;;  %v615_v45 = vmul.f32 %v613_v35, %v1339_v28  ;;  %v616_v48 = vmul.f32 %v613_v35, %v1341_v29 }
  0x72   :  { %v560_v49 = vadd.f32 %v556_v22, %v555_v21  ;;  %v606_v47 = vstv %s1647_s19  ;;  %v627_v50 = vstv %s1649_s20  ;;  %v629_v53 = vstv %s1651_s21  ;;  %s1874_s19 = sld [smem:[#allocation5 + $0x58]]  ;;  %s1876_s20 = sld [smem:[#allocation5 + $0x59]] }
  0x73   :  { %v601_v56 = vmul.f32 %v597_v5, %v1343_v33  ;;  %v602_v52 = vadd.f32 %v598_v20, %v596_v18  ;;  %v603_v58 = vadd.f32 %v599_v32, %v596_v18  ;;  %v604_v59 = vadd.f32 %v600_v23, %v596_v18  ;;  %s1923_s21 = sld [smem:[#allocation5 + $0x5a]] }
  0x74   :  { %v1685_v60 = vmin.f32 %v561_v30, %v557_v37  ;;  %v617_v12 = vmul.f32 %v613_v35, %v1343_v33  ;;  %v618_v14 = vadd.f32 %v614_v46, %v612_v39  ;;  %v619_v15 = vadd.f32 %v615_v45, %v612_v39 }
  0x75   :  { %v620_v16 = vadd.f32 %v616_v48, %v612_v39  ;;  %v622_v17 = vstv %s1662_s22  ;;  %v628_v19 = vmul.f32 %v627_v50, %v1335_v26  ;;  %v630_v21 = vmul.f32 %v629_v53, %v1333_v25  ;;  %s1925_s22 = sld [smem:[#allocation5 + $0x5b]] }
  0x76   :  { %v1691_v22 = vmin.f32 %v562_v31, %v558_v36  ;;  %v1693_v34 = vmin.f32 %v563_v61, %v559_v38  ;;  %v631_v5 = vmul.f32 %v629_v53, %v1339_v28  ;;  %v632_v20 = vmul.f32 %v629_v53, %v1341_v29 }
  0x77   :  { %v605_v30 = vadd.f32 %v601_v56, %v596_v18  ;;  %v1701_v32 = vadd.f32 %v606_v47, %v602_v52  ;;  %v1703_v23 = vadd.f32 %v606_v47, %v603_v58  ;;  %v1705_v31 = vadd.f32 %v606_v47, %v604_v59 }
  0x78   :  { %v621_v61 = vadd.f32 %v617_v12, %v612_v39  ;;  %v623_v35 = vadd.f32 %v622_v17, %v618_v14  ;;  %v1709_v37 = vadd.f32 %v622_v17, %v619_v15  ;;  %v633_v36 = vmul.f32 %v629_v53, %v1343_v33 }
  0x79   :  { %v1712_v38 = vadd.f32 %v622_v17, %v620_v16  ;;  %v634_v46 = vadd.f32 %v630_v21, %v628_v19  ;;  %v677_v18 = vstv %s1675_s1  ;;  %v679_v45 = vstv %s1677_s23  ;;  %s1942_s1 = sld [smem:[#allocation5 + $0x5c]]  ;;  %s1966_s23 = sld [smem:[#allocation5 + $0x5d]] }
  0x7a   :  { %v1720_v48 = vmin.f32 %v564_v42, %v560_v49  ;;  %v635_v50 = vadd.f32 %v631_v5, %v628_v19  ;;  %v636_v56 = vadd.f32 %v632_v20, %v628_v19  ;;  %v638_v52 = vstv %s1679_s24  ;;  %s1977_s24 = sld [smem:[#allocation5 + $0x5e]] }
  0x7b   :  { %v1725_v39 = vadd.f32 %v606_v47, %v605_v30  ;;  %v678_v53 = vmul.f32 %v677_v18, %v1335_v26  ;;  %v680_v58 = vmul.f32 %v679_v45, %v1333_v25  ;;  %v681_v59 = vmul.f32 %v679_v45, %v1339_v28 }
  0x7c   :  { %v1730_v12 = vadd.f32 %v622_v17, %v621_v61  ;;  %v637_v42 = vadd.f32 %v633_v36, %v628_v19  ;;  %v643_v49 = vmin.f32 %v1701_v32, %v623_v35  ;;  %v682_v14 = vmul.f32 %v679_v45, %v1341_v29 }
  0x7d   :  { %v639_v15 = vadd.f32 %v638_v52, %v634_v46  ;;  %v644_v47 = vmin.f32 %v1703_v23, %v1709_v37  ;;  %v645_v16 = vmin.f32 %v1705_v31, %v1712_v38  ;;  %v683_v21 = vmul.f32 %v679_v45, %v1343_v33 }
  0x7e   :  { %v640_v5 = vadd.f32 %v638_v52, %v635_v50  ;;  %v641_v20 = vadd.f32 %v638_v52, %v636_v56  ;;  %v693_v17 = vstv %s1697_s25  ;;  %v695_v19 = vstv %s1699_s26  ;;  %s1979_s25 = sld [smem:[#allocation5 + $0x5f]]  ;;  %s2008_s26 = sld [smem:[#allocation5 + $0x60]] }
  0x7f   :  { %v684_v30 = vadd.f32 %v680_v58, %v678_v53  ;;  %v685_v32 = vadd.f32 %v681_v59, %v678_v53  ;;  %v688_v61 = vstv %s1707_s27  ;;  %v694_v35 = vmul.f32 %v693_v17, %v1335_v26  ;;  %s2020_s27 = sld [smem:[#allocation5 + $0x61]] }
  0x80   :  { %v686_v23 = vadd.f32 %v682_v14, %v678_v53  ;;  %v696_v37 = vmul.f32 %v695_v19, %v1333_v25  ;;  %v697_v31 = vmul.f32 %v695_v19, %v1339_v28  ;;  %v698_v36 = vmul.f32 %v695_v19, %v1341_v29 }
  0x81   :  { %v687_v38 = vadd.f32 %v683_v21, %v678_v53  ;;  %v699_v46 = vmul.f32 %v695_v19, %v1343_v33  ;;  %v709_v18 = vstv %s1714_s28  ;;  %v711_v45 = vstv %s1716_s29  ;;  %s2022_s28 = sld [smem:[#allocation5 + $0x62]]  ;;  %s2136_s29 = sld [smem:[#allocation5 + $0x63]] }
  0x82   :  { %v700_v50 = vadd.f32 %v696_v37, %v694_v35  ;;  %v701_v56 = vadd.f32 %v697_v31, %v694_v35  ;;  %v704_v58 = vstv %s1723_s30  ;;  %v710_v59 = vmul.f32 %v709_v18, %v1335_v26  ;;  %s2138_s30 = sld [smem:[#allocation5 + $0x64]] }
  0x83   :  { %v702_v14 = vadd.f32 %v698_v36, %v694_v35  ;;  %v703_v17 = vadd.f32 %v699_v46, %v694_v35  ;;  %v712_v3 = vmul.f32 %v711_v45, %v1333_v25  ;;  %v713_v2 = vmul.f32 %v711_v45, %v1339_v28 }
  0x84   :  { %v642_v1 = vadd.f32 %v638_v52, %v637_v42  ;;  %v646_v53 = vmin.f32 %v1725_v39, %v1730_v12  ;;  %v714_v21 = vmul.f32 %v711_v45, %v1341_v29  ;;  %v715_v19 = vmul.f32 %v711_v45, %v1343_v33 }
  0x85   :  { %v1765_v37 = vmin.f32 %v643_v49, %v639_v15  ;;  %v689_v31 = vadd.f32 %v688_v61, %v684_v30  ;;  %v705_v36 = vadd.f32 %v704_v58, %v700_v50  ;;  %v716_v35 = vadd.f32 %v712_v3, %v710_v59 }
  0x86   :  { %v1771_v52 = vadd.f32 %v688_v61, %v685_v32  ;;  %v1773_v39 = vadd.f32 %v688_v61, %v686_v23  ;;  %v1775_v12 = vadd.f32 %v688_v61, %v687_v38  ;;  %v720_v42 = vstv %s1739_s3  ;;  %s2175_s3 = sld [smem:[#allocation5 + $0x65]] }
  0x87   :  { %v1778_v46 = vadd.f32 %v704_v58, %v701_v56  ;;  %v1780_v49 = vadd.f32 %v704_v58, %v702_v14  ;;  %v1782_v15 = vadd.f32 %v704_v58, %v703_v17  ;;  %v717_v3 = vadd.f32 %v713_v2, %v710_v59 }
  0x88   :  { %v718_v30 = vadd.f32 %v714_v21, %v710_v59  ;;  %v719_v18 = vadd.f32 %v715_v19, %v710_v59  ;;  %v759_v32 = vstv %s1748_s4  ;;  %v761_v23 = vstv %s1750_s5  ;;  %s2187_s4 = sld [smem:[#allocation5 + $0x66]]  ;;  %s2198_s5 = sld [smem:[#allocation5 + $0x67]] }
  0x89   :  { %v1792_v61 = vmin.f32 %v644_v47, %v640_v5  ;;  %v1794_v38 = vmin.f32 %v645_v16, %v641_v20  ;;  %v721_v45 = vadd.f32 %v720_v42, %v716_v35  ;;  %v725_v50 = vmin.f32 %v689_v31, %v705_v36 }
  0x8a   :  { %v760_v2 = vmul.f32 %v759_v32, %v1335_v26  ;;  %v762_v56 = vmul.f32 %v761_v23, %v1333_v25  ;;  %v763_v58 = vmul.f32 %v761_v23, %v1339_v28  ;;  %v764_v59 = vmul.f32 %v761_v23, %v1341_v29 }
  0x8b   :  { %v1800_v14 = vmin.f32 %v646_v53, %v642_v1  ;;  %v726_v47 = vmin.f32 %v1771_v52, %v1778_v46  ;;  %v727_v16 = vmin.f32 %v1773_v39, %v1780_v49  ;;  %v765_v5 = vmul.f32 %v761_v23, %v1343_v33 }
  0x8c   :  { %v722_v20 = vadd.f32 %v720_v42, %v717_v3  ;;  %v723_v17 = vadd.f32 %v720_v42, %v718_v30  ;;  %v724_v21 = vadd.f32 %v720_v42, %v719_v18  ;;  %v728_v19 = vmin.f32 %v1775_v12, %v1782_v15 }
  0x8d   :  { %v1809_v31 = vmin.f32 %v725_v50, %v721_v45  ;;  %v770_v1 = vstv %s1763_s6  ;;  %v775_v53 = vstv %s1767_s7  ;;  %v777_v36 = vstv %s1769_s8  ;;  %s2200_s6 = sld [smem:[#allocation5 + $0x68]]  ;;  %s2224_s7 = sld [smem:[#allocation5 + $0x69]] }
  0x8e   :  { %v766_v35 = vadd.f32 %v762_v56, %v760_v2  ;;  %v767_v52 = vadd.f32 %v763_v58, %v760_v2  ;;  %v768_v39 = vadd.f32 %v764_v59, %v760_v2  ;;  %v776_v46 = vmul.f32 %v775_v53, %v1335_v26  ;;  %s2235_s8 = sld [smem:[#allocation5 + $0x6a]] }
  0x8f   :  { %2427 = vst [vmem:[#allocation17_spill] sm:$0xff] %v1809_v31  ;;  %v769_v49 = vadd.f32 %v765_v5, %v760_v2  ;;  %v778_v42 = vmul.f32 %v777_v36, %v1333_v25  ;;  %v779_v12 = vmul.f32 %v777_v36, %v1339_v28  ;;  %v780_v15 = vmul.f32 %v777_v36, %v1341_v29 }
  0x90   :  { %v781_v3 = vmul.f32 %v777_v36, %v1343_v33  ;;  %v786_v30 = vstv %s1784_s9  ;;  %v791_v18 = vstv %s1786_s10  ;;  %v793_v32 = vstv %s1788_s11  ;;  %s2237_s9 = sld [smem:[#allocation5 + $0x6b]] }
  0x91   :  { %v782_v23 = vadd.f32 %v778_v42, %v776_v46  ;;  %v783_v45 = vadd.f32 %v779_v12, %v776_v46  ;;  %v784_v50 = vadd.f32 %v780_v15, %v776_v46  ;;  %v792_v2 = vmul.f32 %v791_v18, %v1335_v26 }
  0x92   :  { %v785_v56 = vadd.f32 %v781_v3, %v776_v46  ;;  %v794_v58 = vmul.f32 %v793_v32, %v1333_v25  ;;  %v795_v59 = vmul.f32 %v793_v32, %v1339_v28  ;;  %v796_v5 = vmul.f32 %v793_v32, %v1341_v29 }
  0x93   :  { %v1834_v53 = vadd.f32 %v770_v1, %v766_v35  ;;  %v1836_v36 = vadd.f32 %v770_v1, %v767_v52  ;;  %v1838_v0 = vadd.f32 %v786_v30, %v782_v23  ;;  %v797_v42 = vmul.f32 %v793_v32, %v1343_v33 }
  0x94   :  { %v1843_v46 = vadd.f32 %v770_v1, %v768_v39  ;;  %v1845_v12 = vadd.f32 %v786_v30, %v783_v45  ;;  %v1847_v15 = vadd.f32 %v786_v30, %v784_v50  ;;  %v798_v3 = vadd.f32 %v794_v58, %v792_v2 }
  0x95   :  { %vm163_vm0 = vcmp.ge.f32.partialorder %v1423_v54, 0.0  ;;  %vm241_vm1 = vcmp.ge.f32.partialorder %v1466_v43, 0.0  ;;  %v1855_v35 = vmin.f32 %v726_v47, %v722_v20  ;;  %v1857_v52 = vmin.f32 %v727_v16, %v723_v17 }
  0x96   :  { %v799_v39 = vadd.f32 %v795_v59, %v792_v2  ;;  %v802_v18 = vstv %s1811_s12  ;;  %vm164_vm2 = vcmp.ge.f32.partialorder %v1425_v55, 0.0  ;;  %vm242_vm3 = vcmp.ge.f32.partialorder %v1468_v44, 0.0  ;;  %vm1936_vm15 = vmor %vm163_vm0, %vm241_vm1 }
  0x97   :  { %2428 = vst [vmem:[#allocation18_spill] sm:$0xff] %v1855_v35  ;;  %2429 = vst [vmem:[#allocation19_spill] sm:$0xff] %v1857_v52  ;;  %v1862_v32 = vmin.f32 %v728_v19, %v724_v21  ;;  %v1864_v23 = vadd.f32 %v770_v1, %v769_v49  ;;  %v1866_v45 = vadd.f32 %v786_v30, %v785_v56  ;;  %vm165_vm4 = vcmp.ge.f32.partialorder %v1435_v10, 0.0 }
  0x98   :  { %v800_v50 = vadd.f32 %v796_v5, %v792_v2  ;;  %vm243_vm5 = vcmp.ge.f32.partialorder %v1473_v51, 0.0  ;;  %v801_v47 = vadd.f32 %v797_v42, %v792_v2  ;;  %v841_v20 = vstv %s1820_s13  ;;  %vm1948_vm14 = vmor %vm164_vm2, %vm242_vm3 }
  0x99   :  { %2430 = vst [vmem:[#allocation20_spill] sm:$0xff] %v1862_v32  ;;  %v843_v17 = vstv %s1822_s14  ;;  %vm166_vm6 = vcmp.ge.f32.partialorder %v1437_v11, 0.0  ;;  %vm244_vm7 = vcmp.ge.f32.partialorder %v1476_v57, 0.0  ;;  %v1882_v21 = vadd.f32 %v802_v18, %v798_v3  ;;  %vm1960_vm1 = vmor %vm165_vm4, %vm243_vm5 }
  0x9a   :  { %v842_v49 = vmul.f32 %v841_v20, %v1335_v26  ;;  %vm323_vm8 = vcmp.ge.f32.partialorder %v1533_v7, 0.0  ;;  %v1890_v30 = vadd.f32 %v802_v18, %v799_v39  ;;  %v844_v2 = vmul.f32 %v843_v17, %v1333_v25  ;;  %vm1972_vm3 = vmor %vm166_vm6, %vm244_vm7 }
  0x9b   :  { %v845_v56 = vmul.f32 %v843_v17, %v1339_v28  ;;  %v846_v58 = vmul.f32 %v843_v17, %v1341_v29  ;;  %vm324_vm9 = vcmp.ge.f32.partialorder %v1535_v8, 0.0  ;;  %v1896_v59 = vadd.f32 %v802_v18, %v800_v50  ;;  %vm1985_vm5 = vmor %vm1936_vm15, %vm323_vm8 }
  0x9c   :  { %v847_v42 = vmul.f32 %v843_v17, %v1343_v33  ;;  %v852_v3 = vstv %s1832_s15  ;;  %vm325_vm10 = vcmp.ge.f32.partialorder %v1540_v13, 0.0  ;;  %v1903_v39 = vadd.f32 %v802_v18, %v801_v47  ;;  %vm2002_vm7 = vmor %vm1948_vm14, %vm324_vm9 }
  0x9d   :  { %v848_v20 = vadd.f32 %v844_v2, %v842_v49  ;;  %v849_v1 = vadd.f32 %v845_v56, %v842_v49  ;;  %v850_v19 = vadd.f32 %v846_v58, %v842_v49  ;;  %vm326_vm11 = vcmp.ge.f32.partialorder %v1546_v24, 0.0  ;;  %vm2014_vm15 = vmor %vm1960_vm1, %vm325_vm10 }
  0x9e   :  { %v851_v16 = vadd.f32 %v847_v42, %v842_v49  ;;  %v857_v32 = vstv %s1841_s0  ;;  %v859_v52 = vstv %s1849_s16  ;;  %v868_v50 = vstv %s1851_s17  ;;  %vm2030_vm10 = vmor %vm1972_vm3, %vm326_vm11 }
  0x9f   :  { %vm405_vm12 = vcmp.ge.f32.partialorder %v1572_v63, 0.0  ;;  %v1910_v17 = vadd.f32 %v852_v3, %v848_v20  ;;  %v1912_v5 = vadd.f32 %v852_v3, %v849_v1  ;;  %v1914_v18 = vadd.f32 %v852_v3, %v850_v19 }
  0xa0   :  { %v858_v47 = vmul.f32 %v857_v32, %v1335_v26  ;;  %v1918_v2 = vadd.f32 %v852_v3, %v851_v16  ;;  %v860_v49 = vmul.f32 %v859_v52, %v1333_v25  ;;  %v861_v56 = vmul.f32 %v859_v52, %v1339_v28  ;;  %vm2058_vm11 = vmor %vm1985_vm5, %vm405_vm12 }
  0xa1   :  { %v862_v58 = vmul.f32 %v859_v52, %v1341_v29  ;;  %v863_v19 = vmul.f32 %v859_v52, %v1343_v33  ;;  %v873_v1 = vstv %s1868_s18  ;;  %v875_v32 = vstv %s1874_s19 }
  0xa2   :  { %v884_v42 = vstv %s1876_s20  ;;  %vm408_vm13 = vcmp.ge.f32.partialorder %v1587_v27, 0.0  ;;  %v864_v3 = vadd.f32 %v860_v49, %v858_v47  ;;  %v865_v20 = vadd.f32 %v861_v56, %v858_v47 }
  0xa3   :  { %v866_v35 = vadd.f32 %v862_v58, %v858_v47  ;;  %v874_v31 = vmul.f32 %v873_v1, %v1335_v26  ;;  %vm487_vm0 = vcmp.ge.f32.partialorder %v1634_v40, 0.0  ;;  %v867_v54 = vadd.f32 %v863_v19, %v858_v47  ;;  %vm2098_vm12 = vmor %vm2030_vm10, %vm408_vm13 }
  0xa4   :  { %v876_v52 = vmul.f32 %v875_v32, %v1333_v25  ;;  %v877_v49 = vmul.f32 %v875_v32, %v1339_v28  ;;  %v878_v56 = vmul.f32 %v875_v32, %v1341_v29  ;;  %vm488_vm2 = vcmp.ge.f32.partialorder %v1636_v41, 0.0 }
  0xa5   :  { %v869_v55 = vadd.f32 %v868_v50, %v864_v3  ;;  %v870_v58 = vadd.f32 %v868_v50, %v865_v20  ;;  %v871_v1 = vadd.f32 %v868_v50, %v866_v35  ;;  %v879_v47 = vmul.f32 %v875_v32, %v1343_v33 }
  0xa6   :  { %vm489_vm4 = vcmp.ge.f32.partialorder %v1653_v62, 0.0  ;;  %v872_v10 = vadd.f32 %v868_v50, %v867_v54  ;;  %v880_v19 = vadd.f32 %v876_v52, %v874_v31  ;;  %v881_v41 = vadd.f32 %v877_v49, %v874_v31  ;;  %v2472_v62 = vld [vmem:[#allocation19_spill] sm:$0xff] }
  0xa7   :  { %v882_v3 = vadd.f32 %v878_v56, %v874_v31  ;;  %vm490_vm6 = vcmp.ge.f32.partialorder %v1655_v6, 0.0  ;;  %v2441_v57 = vmin.f32 %v1834_v53, %v1838_v0  ;;  %v883_v50 = vadd.f32 %v879_v47, %v874_v31  ;;  %v2475_v6 = vld [vmem:[#allocation20_spill] sm:$0xff] }
  0xa8   :  { %v889_v32 = vmin.f32 %v1910_v17, %v869_v55  ;;  %v890_v7 = vmin.f32 %v1912_v5, %v870_v58  ;;  %vm569_vm8 = vcmp.ge.f32.partialorder %v1685_v60, 0.0  ;;  %v885_v0 = vadd.f32 %v884_v42, %v880_v19 }
  0xa9   :  { %v1994_v35 = vmin.f32 %v2441_v57, %v1882_v21  ;;  %v886_v53 = vadd.f32 %v884_v42, %v881_v41  ;;  %v887_v21 = vadd.f32 %v884_v42, %v882_v3  ;;  %v891_v31 = vmin.f32 %v1914_v18, %v871_v1 }
  0xaa   :  { %vm570_vm9 = vcmp.ge.f32.partialorder %v1691_v22, 0.0  ;;  %v888_v5 = vadd.f32 %v884_v42, %v883_v50  ;;  %v892_v17 = vmin.f32 %v1918_v2, %v872_v10  ;;  %v923_v41 = vstv %s1923_s21  ;;  %v2466_v50 = vld [vmem:[#allocation17_spill] sm:$0xff] }
  0xab   :  { %v925_v18 = vstv %s1925_s22  ;;  %v2448_v2 = vmin.f32 %v1836_v36, %v1845_v12  ;;  %v2449_v20 = vmin.f32 %v1843_v46, %v1847_v15  ;;  %v2450_v24 = vmin.f32 %v1864_v23, %v1866_v45 }
  0xac   :  { %v924_v52 = vmul.f32 %v923_v41, %v1335_v26  ;;  %vm572_vm1 = vcmp.ge.f32.partialorder %v1720_v48, 0.0  ;;  %v926_v46 = vmul.f32 %v925_v18, %v1333_v25  ;;  %v927_v12 = vmul.f32 %v925_v18, %v1339_v28 }
  0xad   :  { %v2039_v42 = vmin.f32 %v2448_v2, %v1890_v30  ;;  %v2045_v43 = vmin.f32 %v2449_v20, %v1896_v59  ;;  %v2051_v54 = vmin.f32 %v2450_v24, %v1903_v39  ;;  %v928_v15 = vmul.f32 %v925_v18, %v1341_v29 }
  0xae   :  { %v934_v23 = vstv %s1942_s1  ;;  %vm2453_vm3 = vcmp.ge.f32.partialorder %v1574_v4, 0.0  ;;  %v2076_v45 = vmin.f32 %v889_v32, %v885_v0  ;;  %v2078_v30 = vmin.f32 %v890_v7, %v886_v53 }
  0xaf   :  { %vm2071_vm14 = vmor %vm2002_vm7, %vm2453_vm3  ;;  %v2080_v59 = vmin.f32 %v891_v31, %v887_v21  ;;  %v929_v39 = vmul.f32 %v925_v18, %v1343_v33  ;;  %vm2456_vm5 = vcmp.ge.f32.partialorder %v1578_v9, 0.0  ;;  %v2092_v49 = vmin.f32 %v892_v17, %v888_v5  ;;  %v2469_v21 = vld [vmem:[#allocation18_spill] sm:$0xff] }
  0xb0   :  { %vm2087_vm7 = vmor %vm2014_vm15, %vm2456_vm5  ;;  %v930_v56 = vadd.f32 %v926_v46, %v924_v52  ;;  %v931_v44 = vadd.f32 %v927_v12, %v924_v52  ;;  %v932_v55 = vadd.f32 %v928_v15, %v924_v52  ;;  %vm653_vm15 = vcmp.ge.f32.partialorder %v1794_v38, 0.0 }
  0xb1   :  { %v933_v9 = vadd.f32 %v929_v39, %v924_v52  ;;  %v939_v1 = vstv %s1966_s23  ;;  %v941_v47 = vstv %s1977_s24  ;;  %v950_v51 = vstv %s1979_s25  ;;  %vm2110_vm5 = vmor %vm2058_vm11, %vm487_vm0 }
  0xb2   :  { %vm654_vm3 = vcmp.ge.f32.partialorder %v1800_v14, 0.0  ;;  %v2115_v27 = vadd.f32 %v934_v23, %v930_v56  ;;  %v2117_v19 = vadd.f32 %v934_v23, %v931_v44  ;;  %v2119_v3 = vadd.f32 %v934_v23, %v932_v55  ;;  %vm2126_vm13 = vmor %vm2071_vm14, %vm488_vm2 }
  0xb3   :  { %v940_v11 = vmul.f32 %v939_v1, %v1335_v26  ;;  %vm733_vm0 = vcmp.ge.f32.partialorder %v2466_v50, 0.0  ;;  %v2131_v32 = vadd.f32 %v934_v23, %v933_v9  ;;  %v942_v7 = vmul.f32 %v941_v47, %v1333_v25  ;;  %vm2144_vm2 = vmor %vm2087_vm7, %vm489_vm4  ;;  %v2518_v50 = vld [vmem:[#allocation12_spill] sm:$0xff] }
  0xb4   :  { %v943_v16 = vmul.f32 %v941_v47, %v1339_v28  ;;  %v944_v0 = vmul.f32 %v941_v47, %v1341_v29  ;;  %vm734_vm10 = vcmp.ge.f32.partialorder %v2469_v21, 0.0  ;;  %v945_v31 = vmul.f32 %v941_v47, %v1343_v33  ;;  %vm2157_vm14 = vmor %vm2098_vm12, %vm490_vm6 }
  0xb5   :  { %v955_v8 = vstv %s2008_s26  ;;  %v957_v5 = vstv %s2020_s27  ;;  %v966_v17 = vstv %s2022_s28  ;;  %vm735_vm4 = vcmp.ge.f32.partialorder %v2472_v62, 0.0  ;;  %vm2167_vm11 = vmor %vm2110_vm5, %vm569_vm8 }
  0xb6   :  { %v946_v18 = vadd.f32 %v942_v7, %v940_v11  ;;  %v947_v13 = vadd.f32 %v943_v16, %v940_v11  ;;  %v948_v2 = vadd.f32 %v944_v0, %v940_v11  ;;  %v956_v20 = vmul.f32 %v955_v8, %v1335_v26  ;;  %vm2181_vm12 = vmor %vm2126_vm13, %vm570_vm9 }
  0xb7   :  { %vm736_vm6 = vcmp.ge.f32.partialorder %v2475_v6, 0.0  ;;  %v949_v52 = vadd.f32 %v945_v31, %v940_v11  ;;  %v958_v36 = vmul.f32 %v957_v5, %v1333_v25  ;;  %v959_v46 = vmul.f32 %v957_v5, %v1339_v28  ;;  %vm2206_vm13 = vmor %vm2157_vm14, %vm572_vm1 }
  0xb8   :  { %v960_v12 = vmul.f32 %v957_v5, %v1341_v29  ;;  %vm815_vm8 = vcmp.ge.f32.partialorder %v1994_v35, 0.0  ;;  %v951_v15 = vadd.f32 %v950_v51, %v946_v18  ;;  %v952_v23 = vadd.f32 %v950_v51, %v947_v13 }
  0xb9   :  { %v953_v63 = vadd.f32 %v950_v51, %v948_v2  ;;  %v961_v39 = vmul.f32 %v957_v5, %v1343_v33  ;;  %vm2478_vm7 = vcmp.ge.f32.partialorder %v1693_v34, 0.0  ;;  %v954_v4 = vadd.f32 %v950_v51, %v949_v52 }
  0xba   :  { %vm2193_vm5 = vmor %vm2144_vm2, %vm2478_vm7  ;;  %v962_v56 = vadd.f32 %v958_v36, %v956_v20  ;;  %v963_v44 = vadd.f32 %v959_v46, %v956_v20  ;;  %v964_v55 = vadd.f32 %v960_v12, %v956_v20  ;;  %v971_v9 = vmin.f32 %v2115_v27, %v951_v15 }
  0xbb   :  { %v965_v58 = vadd.f32 %v961_v39, %v956_v20  ;;  %v972_v1 = vmin.f32 %v2117_v19, %v952_v23  ;;  %v973_v47 = vmin.f32 %v2119_v3, %v953_v63  ;;  %vm2483_vm7 = vcmp.ge.f32.partialorder %v1765_v37, 0.0 }
  0xbc   :  { %vm2218_vm9 = vmor %vm2167_vm11, %vm2483_vm7  ;;  %vm818_vm1 = vcmp.ge.f32.partialorder %v2051_v54, 0.0  ;;  %v967_v51 = vadd.f32 %v966_v17, %v962_v56  ;;  %v968_v10 = vadd.f32 %v966_v17, %v963_v44  ;;  %v969_v11 = vadd.f32 %v966_v17, %v964_v55 }
  0xbd   :  { %v974_v27 = vmin.f32 %v2131_v32, %v954_v4  ;;  %vm2486_vm14 = vcmp.ge.f32.partialorder %v1792_v61, 0.0  ;;  %vm897_vm11 = vcmp.ge.f32.partialorder %v2076_v45, 0.0  ;;  %v970_v19 = vadd.f32 %v966_v17, %v965_v58  ;;  %vm2245_vm7 = vmor %vm2193_vm5, %vm653_vm15 }
  0xbe   :  { %vm2230_vm2 = vmor %vm2181_vm12, %vm2486_vm14  ;;  %v1005_v3 = vstv %s2136_s29  ;;  %v1007_v40 = vstv %s2138_s30  ;;  %vm898_vm12 = vcmp.ge.f32.partialorder %v2078_v30, 0.0  ;;  %v2250_v57 = vmin.f32 %v971_v9, %v967_v51 }
  0xbf   :  { %v2252_v32 = vmin.f32 %v972_v1, %v968_v10  ;;  %v1006_v7 = vmul.f32 %v1005_v3, %v1335_v26  ;;  %vm2259_vm14 = vmor %vm2206_vm13, %vm654_vm3  ;;  %vm899_vm15 = vcmp.ge.f32.partialorder %v2080_v59, 0.0  ;;  %v2264_v16 = vmin.f32 %v973_v47, %v969_v11 }
  0xc0   :  { %v1008_v0 = vmul.f32 %v1007_v40, %v1333_v25  ;;  %v1009_v53 = vmul.f32 %v1007_v40, %v1339_v28  ;;  %v1010_v31 = vmul.f32 %v1007_v40, %v1341_v29  ;;  %vm2273_vm3 = vmor %vm2218_vm9, %vm733_vm0  ;;  %v2278_v8 = vmin.f32 %v974_v27, %v970_v19 }
  0xc1   :  { %v1011_v5 = vmul.f32 %v1007_v40, %v1343_v33  ;;  %v1016_v17 = vstv %s2175_s3  ;;  %vm2286_vm13 = vmor %vm2230_vm2, %vm734_vm10  ;;  %vm979_vm0 = vcmp.ge.f32.partialorder %v2250_v57, 0.0  ;;  %vm980_vm5 = vcmp.ge.f32.partialorder %v2252_v32, 0.0 }
  0xc2   :  { %v1012_v41 = vadd.f32 %v1008_v0, %v1006_v7  ;;  %v1013_v18 = vadd.f32 %v1009_v53, %v1006_v7  ;;  %v1014_v13 = vadd.f32 %v1010_v31, %v1006_v7  ;;  %vm2295_vm9 = vmor %vm2245_vm7, %vm735_vm4  ;;  %v1021_v20 = vstv %s2187_s4 }
  0xc3   :  { %v1015_v21 = vadd.f32 %v1011_v5, %v1006_v7  ;;  %v1023_v24 = vstv %s2198_s5  ;;  %v1032_v52 = vstv %s2200_s6  ;;  %vm2307_vm10 = vmor %vm2259_vm14, %vm736_vm6  ;;  %vm981_vm4 = vcmp.ge.f32.partialorder %v2264_v16, 0.0 }
  0xc4   :  { %v1017_v36 = vadd.f32 %v1016_v17, %v1012_v41  ;;  %v1018_v46 = vadd.f32 %v1016_v17, %v1013_v18  ;;  %v1019_v12 = vadd.f32 %v1016_v17, %v1014_v13  ;;  %v1022_v60 = vmul.f32 %v1021_v20, %v1335_v26  ;;  %vm2317_vm2 = vmor %vm2273_vm3, %vm815_vm8  ;;  %v2519_v41 = vld [vmem:[#allocation13_spill] sm:$0xff]  ;;  %v2520_v13 = vld [vmem:[#allocation14_spill] sm:$0xff] }
  0xc5   :  { %v1020_v15 = vadd.f32 %v1016_v17, %v1015_v21  ;;  %v1024_v23 = vmul.f32 %v1023_v24, %v1333_v25  ;;  %v1025_v63 = vmul.f32 %v1023_v24, %v1339_v28  ;;  %v1026_v39 = vmul.f32 %v1023_v24, %v1341_v29  ;;  %vm2349_vm3 = vmor %vm2307_vm10, %vm818_vm1  ;;  %v2521_v21 = vld [vmem:[#allocation15_spill] sm:$0xff] }
  0xc6   :  { %vm2503_vm6 = vcmp.ge.f32.partialorder %v2039_v42, 0.0  ;;  %v1027_v35 = vmul.f32 %v1023_v24, %v1343_v33  ;;  %v1037_v4 = vstv %s2224_s7  ;;  %v1039_v56 = vstv %s2235_s8 }
  0xc7   :  { %vm2328_vm7 = vmor %vm2286_vm13, %vm2503_vm6  ;;  %v1048_v44 = vstv %s2237_s9  ;;  %vm2506_vm8 = vcmp.ge.f32.partialorder %v2045_v43, 0.0  ;;  %v1028_v42 = vadd.f32 %v1024_v23, %v1022_v60  ;;  %v1029_v34 = vadd.f32 %v1025_v63, %v1022_v60 }
  0xc8   :  { %vm2340_vm14 = vmor %vm2295_vm9, %vm2506_vm8  ;;  %v1030_v58 = vadd.f32 %v1026_v39, %v1022_v60  ;;  %v1038_v9 = vmul.f32 %v1037_v4, %v1335_v26  ;;  %v1031_v43 = vadd.f32 %v1027_v35, %v1022_v60  ;;  %v1040_v47 = vmul.f32 %v1039_v56, %v1333_v25 }
  0xc9   :  { %v1041_v48 = vmul.f32 %v1039_v56, %v1339_v28  ;;  %v1042_v51 = vmul.f32 %v1039_v56, %v1341_v29  ;;  %vm2360_vm13 = vmor %vm2317_vm2, %vm897_vm11  ;;  %v1033_v54 = vadd.f32 %v1032_v52, %v1028_v42  ;;  %v1034_v10 = vadd.f32 %v1032_v52, %v1029_v34 }
  0xca   :  { %v1035_v11 = vadd.f32 %v1032_v52, %v1030_v58  ;;  %v1043_v27 = vmul.f32 %v1039_v56, %v1343_v33  ;;  %vm2369_vm1 = vmor %vm2328_vm7, %vm898_vm12  ;;  %v1036_v28 = vadd.f32 %v1032_v52, %v1031_v43  ;;  %v1044_v29 = vadd.f32 %v1040_v47, %v1038_v9 }
  0xcb   :  { %v1045_v45 = vadd.f32 %v1041_v48, %v1038_v9  ;;  %v1046_v37 = vadd.f32 %v1042_v51, %v1038_v9  ;;  %vm2377_vm11 = vmor %vm2340_vm14, %vm899_vm15  ;;  %v1053_v30 = vmin.f32 %v1017_v36, %v1033_v54  ;;  %v1054_v3 = vmin.f32 %v1018_v46, %v1034_v10 }
  0xcc   :  { %v1047_v33 = vadd.f32 %v1043_v27, %v1038_v9  ;;  %v1055_v40 = vmin.f32 %v1019_v12, %v1035_v11  ;;  %vm2517_vm12 = vcmp.ge.f32.partialorder %v2092_v49, 0.0  ;;  %v1049_v61 = vadd.f32 %v1048_v44, %v1044_v29  ;;  %vm983_vm15 = vmor %vm2360_vm13, %vm979_vm0 }
  0xcd   :  { %vm904_vm9 = vmor %vm2349_vm3, %vm2517_vm12  ;;  %v1050_v7 = vadd.f32 %v1048_v44, %v1045_v45  ;;  %v1051_v38 = vadd.f32 %v1048_v44, %v1046_v37  ;;  %v1056_v0 = vmin.f32 %v1020_v15, %v1036_v28  ;;  %vm982_vm10 = vcmp.ge.f32.partialorder %v2278_v8, 0.0 }
  0xce   :  { %v1052_v59 = vadd.f32 %v1048_v44, %v1047_v33  ;;  %vm984_vm2 = vmor %vm2369_vm1, %vm980_vm5  ;;  %v1057_v49 = vmin.f32 %v1053_v30, %v1049_v61  ;;  %v1293_v57 = vmov 0.0  }
  0xcf   :  { %v1058_v53 = vmin.f32 %v1054_v3, %v1050_v7  ;;  %v1059_v31 = vmin.f32 %v1055_v40, %v1051_v38  ;;  %vm985_vm6 = vmor %vm2377_vm11, %vm981_vm4 }
  0xd0   :  { %v1060_v14 = vmin.f32 %v1056_v0, %v1052_v59  ;;  %vm986_vm7 = vmor %vm904_vm9, %vm982_vm10  ;;  %vm1061_vm8 = vcmp.ge.f32.partialorder %v1057_v49, 0.0 }
  0xd1   :  { %vm1062_vm14 = vcmp.ge.f32.partialorder %v1058_v53, 0.0  ;;  %vm1063_vm3 = vcmp.ge.f32.partialorder %v1059_v31, 0.0  ;;  %vm1065_vm13 = vmor %vm983_vm15, %vm1061_vm8 }
  0xd2   :  { %vm1064_vm0 = vcmp.ge.f32.partialorder %v1060_v14, 0.0  ;;  %vm1066_vm12 = vmor %vm984_vm2, %vm1062_vm14  ;;  %v1242_v32 = vsel %vm1065_vm13, 1.0, %v1293_v57 }
  0xd3   :  { %vm1067_vm1 = vmor %vm985_vm6, %vm1063_vm3  ;;  %v1243_v8 = vsel %vm1066_vm12, 1.0, %v1293_v57  ;;  %v1084_v16 = vsub.f32 %v1242_v32, %v2518_v50 }
  0xd4   :  { %vm1068_vm5 = vmor %vm986_vm7, %vm1064_vm0  ;;  %v1244_v5 = vsel %vm1067_vm1, 1.0, %v1293_v57  ;;  %v1085_v18 = vsub.f32 %v1243_v8, %v2519_v41 }
  0xd5   :  { %v1245_v17 = vsel %vm1068_vm5, 1.0, %v1293_v57  ;;  %v1086_v2 = vsub.f32 %v1244_v5, %v2520_v13 }
  0xd6   :  { %v1087_v20 = vsub.f32 %v1245_v17, %v2521_v21 }
  0xd7   :  { %1288 = dma.done.wait [#allocation3], 512 }
  0xd8   :  { %1289 = vsyncadd [#allocation3], 4294966784  ;;  %v1088_v24 = vmul.f32 %v1084_v16, %v1084_v16  ;;  %v1089_v52 = vmul.f32 %v1085_v18, %v1085_v18  ;;  %v1090_v62 = vmul.f32 %v1086_v2, %v1086_v2  ;;  %v1091_v36 = vmul.f32 %v1087_v20, %v1087_v20  ;;  %s1294_s10 = smov [#allocation6]  }
  0xd9   :  { %s1113_s11 = sshll.u32 %s1294_s10, 4  ;;  %s1114_s11 = int_to_ptr.vmem [resolvable:$true] %s1113_s11 }
  0xda   :  { %v1092_v46 = vadd.f32 %v1089_v52, %v1088_v24  ;;  %s1264_s13 = scalar_lea.vmem %s1114_s11, 16  ;;  %s1268_s14 = scalar_lea.vmem %s1114_s11, 32 }
  0xdb   :  { %p1265_p5 = scmp.ne.s32.totalorder %s1114_s11, %s1264_s13  ;;  %p1269_p6 = scmp.lt.s32.totalorder %s1114_s11, %s1114_s11 }
  0xdc   :  { %v1093_v12 = vadd.f32 %v1092_v46, %v1090_v62  ;;  %p1270_p7 = scmp.lt.s32.totalorder %s1268_s14, %s1264_s13 }
  0xde   :  { %v1094_v60 = vadd.f32 %v1093_v12, %v1091_v36  ;;  %p1271_p8 = por %p1270_p7, %p1269_p6 }
  0xe0   :  { %1095 = vadd.xlane.f32.xlu0 %v1094_v60  ;;  %p1272_p9 = pnand %p1271_p8, %p1265_p5 }
 0x16d   :  { %v1096_v6 = vpop.xlane.xlu0 %1095 }
 0x16e   :  { %v1097_v15 = vrot.slane %v1096_v6, 4 }
 0x170   :  { %v1098_v23 = vadd.f32 %v1097_v15, %v1096_v6 }
 0x172   :  { %v1099_v63 = vrot.slane %v1098_v23, 2 }
 0x174   :  { %v1100_v39 = vadd.f32 %v1099_v63, %v1098_v23 }
 0x176   :  { %v1101_v22 = vrot.slane %v1100_v39, 1 }
 0x178   :  { %v1102_v35 = vadd.f32 %v1101_v22, %v1100_v39 }
 0x17a   :  { %1247 = vpush %v1102_v35 }
 0x1ab   :  { %s1248_s12 = spop %1247 }
 0x1ac   :  { %v1104_v4 = vstv %s1248_s12 }
 0x1ad   :  { %1106 = vst [vmem:[#allocation6] sm:$0x1] %v1104_v4 }
 0x1ae   :  { %1275 = shalt.err (!%p1272_p9)
}
 0x1af   :  { %s1276_s16 = scalar_lea.hbm %s2416_s2, 16 }
 0x1b0   :  { %p1277_p10 = scmp.ne.s32.totalorder %s2416_s2, %s1276_s16  ;;  %p1280_p11 = scmp.lt.u32.totalorder %s1276_s16, %s2416_s2 }
 0x1b2   :  { %p1282_p12 = pnand %p1280_p11, %p1277_p10 }
 0x1b4   :  { %1285 = shalt.err (!%p1282_p12)
}
 0x1b5   :  { %1116 = dma.vmem_to_hbm [thread:$0]  %s1114_s11, 16, %s2416_s2, [#allocation7]  }
 0x1b6   :  { %1290 = dma.done.wait [#allocation7], 16  }
 0x1b7   :  { %1291 = vsyncadd [#allocation7], 4294967280 }
 0x1b8   :  { %1120 = vsyncpa [#allocation7], 1 }
 0x1b9   :  { %1121 = vsyncmov [#allocation3] }
 0x1bc   :  { %s1122_s1 = vpop.sfrf %1121 }
 0x1bd   :  { %p1246_p13 = scmp.ne.s32.totalorder %s1122_s1, 0 }
 0x1bf   :  { %1126 = shalt.err (%p1246_p13)  }

</bundles_post_ra>
